<compile_context>
chip_gen: v5e
topology: v5e:2x2
jax: 0.10.0
libtpu: 0.0.40
codegen_flags: <defaults>
</compile_context>

<pallas_src>
import functools

import jax
import jax.numpy as jnp
from jax.experimental import pallas as pl
from jax.experimental.pallas import tpu as pltpu


def _vmem_limit_bytes(*sizes):
    """Generous scoped-VMEM limit derived from the block sizes (covers double
    buffering + compiler slack), capped below v7x's 64 MiB physical VMEM."""
    need = int(sum(int(s) for s in sizes))
    return int(min(max(2 * need + (1 << 20), 8 << 20), 64 << 20))


# -----------------------------------------------------------------------------
# TimeLSTM kernel, time-chunked.
#   grid = (T // tc,) "arbitrary" (serial recurrence); h/c carried across grid
#   steps in VMEM scratch.  Per chunk: one (tc*B, D) @ (D, 4H) MXU matmul for
#   the input projection (bias folded in), then a short static loop over the
#   tc timesteps with one small (B,H)@(H,4H) matmul each.
# -----------------------------------------------------------------------------
def lstm_kernel(x_ref, wx_ref, wh_ref, b_ref, o_ref, h_sc, c_sc):
    tc, B, D = x_ref.shape
    Hd = wh_ref.shape[0]

    @pl.when(pl.program_id(0) == 0)
    def _():
        h_sc[...] = jnp.zeros_like(h_sc)
        c_sc[...] = jnp.zeros_like(c_sc)

    # Hoisted input projection for this time chunk (bf16 MXU, f32 accumulate).
    x_flat = x_ref[...].reshape(tc * B, D)                      # bf16
    xw = jnp.dot(x_flat, wx_ref[...], preferred_element_type=jnp.float32)
    xw = (xw + b_ref[...]).reshape(tc, B, 4 * Hd)               # f32

    h = h_sc[...]                                               # f32 carries
    c = c_sc[...]
    for t in range(tc):                                         # capped unroll == tc
        # h_results[:, t, :] = h   (stored BEFORE the cell update, as in reference)
        o_ref[t] = h.astype(o_ref.dtype)
        a = xw[t] + jnp.dot(h.astype(jnp.bfloat16), wh_ref[...],
                            preferred_element_type=jnp.float32)
        A = jnp.tanh(a)                                         # reference's pre-gate tanh
        f = jax.nn.sigmoid(A[:, 0 * Hd:1 * Hd])
        g = jnp.tanh(A[:, 1 * Hd:2 * Hd])
        i = jax.nn.sigmoid(A[:, 2 * Hd:3 * Hd])
        o = jax.nn.sigmoid(A[:, 3 * Hd:4 * Hd])
        c_next = f * c + g * i
        h = o * jnp.tanh(c)                                     # OLD c, matches reference
        c = c_next
    h_sc[...] = h
    c_sc[...] = c


def time_lstm(x_tm_bf16, wx_bf, wh_bf, b, time_chunk=4):
    """x_tm_bf16: (T, B, D) bf16 time-major.  Returns h_results (T, B, H) bf16."""
    T, B, D = x_tm_bf16.shape
    Hd = wh_bf.shape[0]
    tc = max(1, min(time_chunk, T))
    while T % tc:
        tc -= 1
    b2d = b.reshape(1, 4 * Hd).astype(jnp.float32)

    vmem = _vmem_limit_bytes(
        tc * B * D * 2,                 # x block (bf16)
        D * 4 * Hd * 2,                 # wx (bf16)
        Hd * 4 * Hd * 2,                # wh (bf16)
        4 * Hd * 4,                     # bias (f32)
        tc * B * Hd * 2,                # out block (bf16)
        2 * B * Hd * 4)                 # h/c scratch (f32)

    return pl.pallas_call(
        lstm_kernel,
        out_shape=jax.ShapeDtypeStruct((T, B, Hd), jnp.bfloat16),
        grid_spec=pltpu.PrefetchScalarGridSpec(
            num_scalar_prefetch=0,
            grid=(T // tc,),
            in_specs=[
                pl.BlockSpec((tc, B, D), lambda i: (i, 0, 0)),
                pl.BlockSpec((D, 4 * Hd), lambda i: (0, 0)),
                pl.BlockSpec((Hd, 4 * Hd), lambda i: (0, 0)),
                pl.BlockSpec((1, 4 * Hd), lambda i: (0, 0)),
            ],
            out_specs=pl.BlockSpec((tc, B, Hd), lambda i: (i, 0, 0)),
            scratch_shapes=[pltpu.VMEM((B, Hd), jnp.float32),
                            pltpu.VMEM((B, Hd), jnp.float32)],
        ),
        compiler_params=pltpu.CompilerParams(
            dimension_semantics=("arbitrary",),     # recurrence => sequential
            vmem_limit_bytes=vmem),
    )(x_tm_bf16, wx_bf, wh_bf, b2d)


# -----------------------------------------------------------------------------
# TimeAffine + softmax kernel: row-tiled (rows, H) @ (H, V) + b, softmax over V.
# Exact normalization (rows sum to 1 up to f32 rounding).
# -----------------------------------------------------------------------------
def affine_softmax_kernel(h_ref, w_ref, b_ref, o_ref):
    logits = jnp.dot(h_ref[...], w_ref[...],
                     preferred_element_type=jnp.float32) + b_ref[...]
    m = jnp.max(logits, axis=-1, keepdims=True)
    e = jnp.exp(logits - m)
    o_ref[...] = e / jnp.sum(e, axis=-1, keepdims=True)


def time_affine_softmax(h_flat_bf16, w_bf, b, row_tile=None):
    """h_flat_bf16: (R, H) bf16.  Returns softmax(h @ w + b) of shape (R, V) f32."""
    R, Hd = h_flat_bf16.shape
    V = w_bf.shape[1]
    if row_tile is None:
        # Size the row tile from a ~4 MiB budget for the double-buffered f32
        # output tile, keep V whole per row (lane-dense output).
        budget_rows = max(8, (4 << 20) // (V * 4 * 2))
        row_tile = min(R, 256, (budget_rows // 8) * 8)
        while row_tile > 8 and R % row_tile:
            row_tile -= 8
        if R % row_tile:
            row_tile = R                      # fallback: single full-extent tile
        # prefer >= 2 grid steps so the "parallel" axis can shard across TCs
        if row_tile == R and R >= 16 and (R // 2) % 8 == 0:
            row_tile = R // 2
    assert R % row_tile == 0
    b2d = b.reshape(1, V).astype(jnp.float32)

    vmem = _vmem_limit_bytes(
        row_tile * Hd * 2,                    # h tile (bf16)
        Hd * V * 2,                           # weight (bf16)
        V * 4,                                # bias (f32)
        row_tile * V * 4)                     # output tile (f32)

    return pl.pallas_call(
        affine_softmax_kernel,
        out_shape=jax.ShapeDtypeStruct((R, V), jnp.float32),
        grid_spec=pltpu.PrefetchScalarGridSpec(
            num_scalar_prefetch=0,
            grid=(R // row_tile,),
            in_specs=[
                pl.BlockSpec((row_tile, Hd), lambda i: (i, 0)),
                pl.BlockSpec((Hd, V), lambda i: (0, 0)),
                pl.BlockSpec((1, V), lambda i: (0, 0)),
            ],
            out_specs=pl.BlockSpec((row_tile, V), lambda i: (i, 0)),
        ),
        compiler_params=pltpu.CompilerParams(
            dimension_semantics=("parallel",),
            vmem_limit_bytes=vmem),
    )(h_flat_bf16, w_bf, b2d)


# -----------------------------------------------------------------------------
# Full simpleLSTM forward (embedding lookup is plain-JAX glue).
# -----------------------------------------------------------------------------
@functools.partial(jax.jit, static_argnames=())
def simple_lstm_forward(idx, fp):
    B, T = idx.shape
    Hd = fp["wh2_bf16"].shape[0]
    V = fp["w_aff_bf16"].shape[1]
    # TimeEmbedding: gather rows directly from the bf16 table, time-major.
    X_tm = jnp.take(fp["emb_w_bf16"], idx.T, axis=0)                   # (T, B, D) bf16
    # dropout_1/2/3: eval-mode identity.
    # time_LSTM_1 output is discarded by the reference (X, not H1, feeds LSTM 2)
    # -> dead code, not computed.
    H_tm = time_lstm(X_tm, fp["wx2_bf16"], fp["wh2_bf16"], fp["b2"])   # (T, B, H) bf16
    # Layout change done on the small bf16 H tensor (not the large f32 probs);
    # the affine kernel then writes a flat (B*T, V) slab that reshapes to
    # (B, T, V) with no further transpose.
    H_bm = jnp.transpose(H_tm, (1, 0, 2)).reshape(B * T, Hd)
    probs = time_affine_softmax(H_bm, fp["w_aff_bf16"], fp["b_aff"])   # (B*T, V) f32
    return probs.reshape(B, T, V)


def make_params(key, vocab_size, wordvec_size, hidden_size):
    ks = jax.random.split(key, 8)
    D, Hd, V = wordvec_size, hidden_size, vocab_size
    return {
        # Embedding: torch.randn(vocab, wordvec)
        "emb_w": jax.random.normal(ks[0], (V, D), jnp.float32),
        # LSTM1 params exist in the module but its output is discarded by the
        # reference forward, so they are never used here.
        "wx1": jax.random.normal(ks[1], (D, 4 * Hd), jnp.float32) * 0.1,
        "wh1": jax.random.normal(ks[2], (Hd, 4 * Hd), jnp.float32) * 0.1,
        "b1": jax.random.normal(ks[3], (4 * Hd,), jnp.float32) * 0.1,
        # LSTM2 (fed X, works because D == Hd); stored as (in, 4H) so y = x @ W
        "wx2": jax.random.normal(ks[4], (Hd, 4 * Hd), jnp.float32) * 0.1,
        "wh2": jax.random.normal(ks[5], (Hd, 4 * Hd), jnp.float32) * 0.1,
        "b2": jax.random.normal(ks[6], (4 * Hd,), jnp.float32) * 0.1,
        # TimeAffine: Linear(hidden -> vocab)
        "w_aff": jax.random.normal(ks[7], (Hd, V), jnp.float32) * 0.1,
        "b_aff": jnp.zeros((V,), jnp.float32),
    }


def prepare_fwd_params(p):
    """One-time bf16 weight copies (done outside jit, not per forward call)."""
    return {
        "emb_w_bf16": p["emb_w"].astype(jnp.bfloat16),
        "wx2_bf16": p["wx2"].astype(jnp.bfloat16),
        "wh2_bf16": p["wh2"].astype(jnp.bfloat16),
        "b2": p["b2"],
        "w_aff_bf16": p["w_aff"].astype(jnp.bfloat16),
        "b_aff": p["b_aff"],
    }


# Pure-JAX f32 reference (same quirky semantics) used as a correctness check.
def _ref_time_lstm(X, wx, wh, b):
    B, T, D = X.shape
    Hd = wh.shape[0]
    h = jnp.zeros((B, Hd), jnp.float32)
    c = jnp.zeros((B, Hd), jnp.float32)
    outs = []
    for t in range(T):
        outs.append(h)
        A = jnp.tanh(X[:, t] @ wx + h @ wh + b)
        f = jax.nn.sigmoid(A[:, :Hd])
        g = jnp.tanh(A[:, Hd:2 * Hd])
        i = jax.nn.sigmoid(A[:, 2 * Hd:3 * Hd])
        o = jax.nn.sigmoid(A[:, 3 * Hd:])
        c_next = f * c + g * i
        h = o * jnp.tanh(c)
        c = c_next
    return jnp.stack(outs, axis=1)


def _ref_forward(idx, p):
    X = jnp.take(p["emb_w"], idx, axis=0)
    H = _ref_time_lstm(X, p["wx2"], p["wh2"], p["b2"])
    V = H @ p["w_aff"] + p["b_aff"]
    return jax.nn.softmax(V, axis=-1)


if __name__ == "__main__":
    # Small TPU-friendly shapes consistent with the module (vocab, D==hidden, B, T).
    VOCAB, D, HID, B, T = 256, 128, 128, 8, 8

    key = jax.random.PRNGKey(0)
    k_idx, k_par = jax.random.split(key)
    idx = jax.random.randint(k_idx, (B, T), 0, VOCAB, dtype=jnp.int32)
    params = make_params(k_par, VOCAB, D, HID)
    fwd_params = prepare_fwd_params(params)

    out = simple_lstm_forward(idx, fwd_params)
    out = jax.block_until_ready(out)
    assert out.shape == (B, T, VOCAB)
    assert out.dtype == jnp.float32

    ref = _ref_forward(idx, params)
    # bf16 matmuls (f32 accumulation) vs f32 reference => loosened tolerance.
    assert jnp.allclose(out, ref, atol=5e-3, rtol=2e-2), "mismatch vs JAX reference"
    # Softmax normalization is exact (plain division), row sums ~1 to f32 rounding.
    assert jnp.allclose(jnp.sum(out, axis=-1), 1.0, atol=1e-3), "softmax rows != 1"

    print("KERNEL_OK")
</pallas_src>

<mosaic_0001>
module attributes {stable_mosaic.version = 11 : i64} {
  func.func @lstm_kernel(%arg0: i32, %arg1: memref<4x8x128xbf16, #tpu.memory_space<vmem>>, %arg2: memref<128x512xbf16, #tpu.memory_space<vmem>>, %arg3: memref<128x512xbf16, #tpu.memory_space<vmem>>, %arg4: memref<1x512xf32, #tpu.memory_space<vmem>>, %arg5: memref<4x8x128xbf16, #tpu.memory_space<vmem>>, %arg6: memref<8x128xf32, #tpu.memory_space<vmem>>, %arg7: memref<8x128xf32, #tpu.memory_space<vmem>>) attributes {dimension_semantics = [#tpu.dimension_semantics<arbitrary>], iteration_bounds = array<i64: 2>, scalar_prefetch = 0 : i64, scratch_operands = 2 : i64, tpu.core_type = #tpu.core_type<tc>, window_params = [{transform_indices = @transform_0, window_bounds = array<i64: 4, 8, 128>}, {pipeline_mode = #tpu.pipeline_mode<synchronous>, transform_indices = @transform_1, window_bounds = array<i64: 128, 512>}, {pipeline_mode = #tpu.pipeline_mode<synchronous>, transform_indices = @transform_2, window_bounds = array<i64: 128, 512>}, {pipeline_mode = #tpu.pipeline_mode<synchronous>, transform_indices = @transform_3, window_bounds = array<i64: 1, 512>}, {transform_indices = @transform_4, window_bounds = array<i64: 4, 8, 128>}]} {
    %c0_i32 = arith.constant 0 : i32
    %0 = arith.cmpi eq, %arg0, %c0_i32 : i32
    %1 = arith.extui %0 : i1 to i32
    %c0_i32_0 = arith.constant 0 : i32
    %2 = arith.cmpi ne, %1, %c0_i32_0 : i32
    scf.if %2 {
      %cst_48 = arith.constant 0.000000e+00 : f32
      %159 = vector.broadcast %cst_48 : f32 to vector<8x128xf32>
      %c0_49 = arith.constant 0 : index
      %c0_50 = arith.constant 0 : index
      %160 = vector.load %arg6[%c0_49, %c0_50] : memref<8x128xf32, #tpu.memory_space<vmem>>, vector<8x128xf32>
      tpu.vector_store %arg6[%c0_49, %c0_50], %159 {strides = array<i32>} : memref<8x128xf32, #tpu.memory_space<vmem>>, vector<8x128xf32>,
      %cst_51 = arith.constant 0.000000e+00 : f32
      %161 = vector.broadcast %cst_51 : f32 to vector<8x128xf32>
      %c0_52 = arith.constant 0 : index
      %c0_53 = arith.constant 0 : index
      %162 = vector.load %arg7[%c0_52, %c0_53] : memref<8x128xf32, #tpu.memory_space<vmem>>, vector<8x128xf32>
      tpu.vector_store %arg7[%c0_52, %c0_53], %161 {strides = array<i32>} : memref<8x128xf32, #tpu.memory_space<vmem>>, vector<8x128xf32>,
    } else {
    }
    %c0 = arith.constant 0 : index
    %c0_1 = arith.constant 0 : index
    %c0_2 = arith.constant 0 : index
    %3 = vector.load %arg1[%c0, %c0_1, %c0_2] : memref<4x8x128xbf16, #tpu.memory_space<vmem>>, vector<4x8x128xbf16>
    %4 = vector.shape_cast %3 : vector<4x8x128xbf16> to vector<32x128xbf16>
    %c0_3 = arith.constant 0 : index
    %c0_4 = arith.constant 0 : index
    %5 = vector.load %arg2[%c0_3, %c0_4] : memref<128x512xbf16, #tpu.memory_space<vmem>>, vector<128x512xbf16>
    %cst = arith.constant dense<0.000000e+00> : vector<32x512xf32>
    %6 = tpu.matmul %4, %5, %cst {dimension_numbers = #tpu.dot_dimension_numbers<[1], [0], [0], [1], [0, 0, 1, 1], [], []>} : vector<32x128xbf16>, vector<128x512xbf16>, vector<32x512xf32> -> vector<32x512xf32>
    %c0_5 = arith.constant 0 : index
    %c0_6 = arith.constant 0 : index
    %7 = vector.load %arg4[%c0_5, %c0_6] : memref<1x512xf32, #tpu.memory_space<vmem>>, vector<1x512xf32>
    %8 = vector.broadcast %7 : vector<1x512xf32> to vector<32x512xf32>
    %9 = arith.addf %6, %8 : vector<32x512xf32>
    %10 = vector.shape_cast %9 : vector<32x512xf32> to vector<4x8x512xf32>
    %c0_7 = arith.constant 0 : index
    %c0_8 = arith.constant 0 : index
    %11 = vector.load %arg6[%c0_7, %c0_8] : memref<8x128xf32, #tpu.memory_space<vmem>>, vector<8x128xf32>
    %c0_9 = arith.constant 0 : index
    %c0_10 = arith.constant 0 : index
    %12 = vector.load %arg7[%c0_9, %c0_10] : memref<8x128xf32, #tpu.memory_space<vmem>>, vector<8x128xf32>
    %13 = arith.truncf %11 : vector<8x128xf32> to vector<8x128xbf16>
    %c0_11 = arith.constant 0 : index
    %c0_12 = arith.constant 0 : index
    %c0_13 = arith.constant 0 : index
    %14 = vector.load %arg5[%c0_11, %c0_12, %c0_13] : memref<4x8x128xbf16, #tpu.memory_space<vmem>>, vector<1x8x128xbf16>
    %15 = vector.shape_cast %14 : vector<1x8x128xbf16> to vector<8x128xbf16>
    %16 = vector.shape_cast %13 : vector<8x128xbf16> to vector<1x8x128xbf16>
    tpu.vector_store %arg5[%c0_11, %c0_12, %c0_13], %16 {strides = array<i32>} : memref<4x8x128xbf16, #tpu.memory_space<vmem>>, vector<1x8x128xbf16>,
    %17 = vector.extract_strided_slice %10 {offsets = [0, 0, 0], sizes = [1, 8, 512], strides = [1, 1, 1]} : vector<4x8x512xf32> to vector<1x8x512xf32>
    %18 = vector.shape_cast %17 : vector<1x8x512xf32> to vector<8x512xf32>
    %19 = arith.truncf %11 : vector<8x128xf32> to vector<8x128xbf16>
    %c0_14 = arith.constant 0 : index
    %c0_15 = arith.constant 0 : index
    %20 = vector.load %arg3[%c0_14, %c0_15] : memref<128x512xbf16, #tpu.memory_space<vmem>>, vector<128x512xbf16>
    %cst_16 = arith.constant dense<0.000000e+00> : vector<8x512xf32>
    %21 = tpu.matmul %19, %20, %cst_16 {dimension_numbers = #tpu.dot_dimension_numbers<[1], [0], [0], [1], [0, 0, 1, 1], [], []>} : vector<8x128xbf16>, vector<128x512xbf16>, vector<8x512xf32> -> vector<8x512xf32>
    %22 = arith.addf %18, %21 : vector<8x512xf32>
    %23 = math.tanh %22 : vector<8x512xf32>
    %24 = vector.extract_strided_slice %23 {offsets = [0, 0], sizes = [8, 128], strides = [1, 1]} : vector<8x512xf32> to vector<8x128xf32>
    %25 = arith.negf %24 : vector<8x128xf32>
    %26 = math.exp %25 : vector<8x128xf32>
    %cst_17 = arith.constant 1.000000e+00 : f32
    %27 = vector.broadcast %cst_17 : f32 to vector<8x128xf32>
    %28 = arith.addf %27, %26 : vector<8x128xf32>
    %29 = arith.divf %27, %28 : vector<8x128xf32>
    %30 = vector.extract_strided_slice %23 {offsets = [0, 128], sizes = [8, 128], strides = [1, 1]} : vector<8x512xf32> to vector<8x128xf32>
    %31 = math.tanh %30 : vector<8x128xf32>
    %32 = vector.extract_strided_slice %23 {offsets = [0, 256], sizes = [8, 128], strides = [1, 1]} : vector<8x512xf32> to vector<8x128xf32>
    %33 = arith.negf %32 : vector<8x128xf32>
    %34 = math.exp %33 : vector<8x128xf32>
    %cst_18 = arith.constant 1.000000e+00 : f32
    %35 = vector.broadcast %cst_18 : f32 to vector<8x128xf32>
    %36 = arith.addf %35, %34 : vector<8x128xf32>
    %37 = arith.divf %35, %36 : vector<8x128xf32>
    %38 = vector.extract_strided_slice %23 {offsets = [0, 384], sizes = [8, 128], strides = [1, 1]} : vector<8x512xf32> to vector<8x128xf32>
    %39 = arith.negf %38 : vector<8x128xf32>
    %40 = math.exp %39 : vector<8x128xf32>
    %cst_19 = arith.constant 1.000000e+00 : f32
    %41 = vector.broadcast %cst_19 : f32 to vector<8x128xf32>
    %42 = arith.addf %41, %40 : vector<8x128xf32>
    %43 = arith.divf %41, %42 : vector<8x128xf32>
    %44 = arith.mulf %29, %12 : vector<8x128xf32>
    %45 = arith.mulf %31, %37 : vector<8x128xf32>
    %46 = arith.addf %44, %45 : vector<8x128xf32>
    %47 = math.tanh %12 : vector<8x128xf32>
    %48 = arith.mulf %43, %47 : vector<8x128xf32>
    %49 = arith.truncf %48 : vector<8x128xf32> to vector<8x128xbf16>
    %c1 = arith.constant 1 : index
    %c0_20 = arith.constant 0 : index
    %c0_21 = arith.constant 0 : index
    %50 = vector.load %arg5[%c1, %c0_20, %c0_21] : memref<4x8x128xbf16, #tpu.memory_space<vmem>>, vector<1x8x128xbf16>
    %51 = vector.shape_cast %50 : vector<1x8x128xbf16> to vector<8x128xbf16>
    %52 = vector.shape_cast %49 : vector<8x128xbf16> to vector<1x8x128xbf16>
    tpu.vector_store %arg5[%c1, %c0_20, %c0_21], %52 {strides = array<i32>} : memref<4x8x128xbf16, #tpu.memory_space<vmem>>, vector<1x8x128xbf16>,
    %53 = vector.extract_strided_slice %10 {offsets = [1, 0, 0], sizes = [1, 8, 512], strides = [1, 1, 1]} : vector<4x8x512xf32> to vector<1x8x512xf32>
    %54 = vector.shape_cast %53 : vector<1x8x512xf32> to vector<8x512xf32>
    %55 = arith.truncf %48 : vector<8x128xf32> to vector<8x128xbf16>
    %c0_22 = arith.constant 0 : index
    %c0_23 = arith.constant 0 : index
    %56 = vector.load %arg3[%c0_22, %c0_23] : memref<128x512xbf16, #tpu.memory_space<vmem>>, vector<128x512xbf16>
    %cst_24 = arith.constant dense<0.000000e+00> : vector<8x512xf32>
    %57 = tpu.matmul %55, %56, %cst_24 {dimension_numbers = #tpu.dot_dimension_numbers<[1], [0], [0], [1], [0, 0, 1, 1], [], []>} : vector<8x128xbf16>, vector<128x512xbf16>, vector<8x512xf32> -> vector<8x512xf32>
    %58 = arith.addf %54, %57 : vector<8x512xf32>
    %59 = math.tanh %58 : vector<8x512xf32>
    %60 = vector.extract_strided_slice %59 {offsets = [0, 0], sizes = [8, 128], strides = [1, 1]} : vector<8x512xf32> to vector<8x128xf32>
    %61 = arith.negf %60 : vector<8x128xf32>
    %62 = math.exp %61 : vector<8x128xf32>
    %cst_25 = arith.constant 1.000000e+00 : f32
    %63 = vector.broadcast %cst_25 : f32 to vector<8x128xf32>
    %64 = arith.addf %63, %62 : vector<8x128xf32>
    %65 = arith.divf %63, %64 : vector<8x128xf32>
    %66 = vector.extract_strided_slice %59 {offsets = [0, 128], sizes = [8, 128], strides = [1, 1]} : vector<8x512xf32> to vector<8x128xf32>
    %67 = math.tanh %66 : vector<8x128xf32>
    %68 = vector.extract_strided_slice %59 {offsets = [0, 256], sizes = [8, 128], strides = [1, 1]} : vector<8x512xf32> to vector<8x128xf32>
    %69 = arith.negf %68 : vector<8x128xf32>
    %70 = math.exp %69 : vector<8x128xf32>
    %cst_26 = arith.constant 1.000000e+00 : f32
    %71 = vector.broadcast %cst_26 : f32 to vector<8x128xf32>
    %72 = arith.addf %71, %70 : vector<8x128xf32>
    %73 = arith.divf %71, %72 : vector<8x128xf32>
    %74 = vector.extract_strided_slice %59 {offsets = [0, 384], sizes = [8, 128], strides = [1, 1]} : vector<8x512xf32> to vector<8x128xf32>
    %75 = arith.negf %74 : vector<8x128xf32>
    %76 = math.exp %75 : vector<8x128xf32>
    %cst_27 = arith.constant 1.000000e+00 : f32
    %77 = vector.broadcast %cst_27 : f32 to vector<8x128xf32>
    %78 = arith.addf %77, %76 : vector<8x128xf32>
    %79 = arith.divf %77, %78 : vector<8x128xf32>
    %80 = arith.mulf %65, %46 : vector<8x128xf32>
    %81 = arith.mulf %67, %73 : vector<8x128xf32>
    %82 = arith.addf %80, %81 : vector<8x128xf32>
    %83 = math.tanh %46 : vector<8x128xf32>
    %84 = arith.mulf %79, %83 : vector<8x128xf32>
    %85 = arith.truncf %84 : vector<8x128xf32> to vector<8x128xbf16>
    %c2 = arith.constant 2 : index
    %c0_28 = arith.constant 0 : index
    %c0_29 = arith.constant 0 : index
    %86 = vector.load %arg5[%c2, %c0_28, %c0_29] : memref<4x8x128xbf16, #tpu.memory_space<vmem>>, vector<1x8x128xbf16>
    %87 = vector.shape_cast %86 : vector<1x8x128xbf16> to vector<8x128xbf16>
    %88 = vector.shape_cast %85 : vector<8x128xbf16> to vector<1x8x128xbf16>
    tpu.vector_store %arg5[%c2, %c0_28, %c0_29], %88 {strides = array<i32>} : memref<4x8x128xbf16, #tpu.memory_space<vmem>>, vector<1x8x128xbf16>,
    %89 = vector.extract_strided_slice %10 {offsets = [2, 0, 0], sizes = [1, 8, 512], strides = [1, 1, 1]} : vector<4x8x512xf32> to vector<1x8x512xf32>
    %90 = vector.shape_cast %89 : vector<1x8x512xf32> to vector<8x512xf32>
    %91 = arith.truncf %84 : vector<8x128xf32> to vector<8x128xbf16>
    %c0_30 = arith.constant 0 : index
    %c0_31 = arith.constant 0 : index
    %92 = vector.load %arg3[%c0_30, %c0_31] : memref<128x512xbf16, #tpu.memory_space<vmem>>, vector<128x512xbf16>
    %cst_32 = arith.constant dense<0.000000e+00> : vector<8x512xf32>
    %93 = tpu.matmul %91, %92, %cst_32 {dimension_numbers = #tpu.dot_dimension_numbers<[1], [0], [0], [1], [0, 0, 1, 1], [], []>} : vector<8x128xbf16>, vector<128x512xbf16>, vector<8x512xf32> -> vector<8x512xf32>
    %94 = arith.addf %90, %93 : vector<8x512xf32>
    %95 = math.tanh %94 : vector<8x512xf32>
    %96 = vector.extract_strided_slice %95 {offsets = [0, 0], sizes = [8, 128], strides = [1, 1]} : vector<8x512xf32> to vector<8x128xf32>
    %97 = arith.negf %96 : vector<8x128xf32>
    %98 = math.exp %97 : vector<8x128xf32>
    %cst_33 = arith.constant 1.000000e+00 : f32
    %99 = vector.broadcast %cst_33 : f32 to vector<8x128xf32>
    %100 = arith.addf %99, %98 : vector<8x128xf32>
    %101 = arith.divf %99, %100 : vector<8x128xf32>
    %102 = vector.extract_strided_slice %95 {offsets = [0, 128], sizes = [8, 128], strides = [1, 1]} : vector<8x512xf32> to vector<8x128xf32>
    %103 = math.tanh %102 : vector<8x128xf32>
    %104 = vector.extract_strided_slice %95 {offsets = [0, 256], sizes = [8, 128], strides = [1, 1]} : vector<8x512xf32> to vector<8x128xf32>
    %105 = arith.negf %104 : vector<8x128xf32>
    %106 = math.exp %105 : vector<8x128xf32>
    %cst_34 = arith.constant 1.000000e+00 : f32
    %107 = vector.broadcast %cst_34 : f32 to vector<8x128xf32>
    %108 = arith.addf %107, %106 : vector<8x128xf32>
    %109 = arith.divf %107, %108 : vector<8x128xf32>
    %110 = vector.extract_strided_slice %95 {offsets = [0, 384], sizes = [8, 128], strides = [1, 1]} : vector<8x512xf32> to vector<8x128xf32>
    %111 = arith.negf %110 : vector<8x128xf32>
    %112 = math.exp %111 : vector<8x128xf32>
    %cst_35 = arith.constant 1.000000e+00 : f32
    %113 = vector.broadcast %cst_35 : f32 to vector<8x128xf32>
    %114 = arith.addf %113, %112 : vector<8x128xf32>
    %115 = arith.divf %113, %114 : vector<8x128xf32>
    %116 = arith.mulf %101, %82 : vector<8x128xf32>
    %117 = arith.mulf %103, %109 : vector<8x128xf32>
    %118 = arith.addf %116, %117 : vector<8x128xf32>
    %119 = math.tanh %82 : vector<8x128xf32>
    %120 = arith.mulf %115, %119 : vector<8x128xf32>
    %121 = arith.truncf %120 : vector<8x128xf32> to vector<8x128xbf16>
    %c3 = arith.constant 3 : index
    %c0_36 = arith.constant 0 : index
    %c0_37 = arith.constant 0 : index
    %122 = vector.load %arg5[%c3, %c0_36, %c0_37] : memref<4x8x128xbf16, #tpu.memory_space<vmem>>, vector<1x8x128xbf16>
    %123 = vector.shape_cast %122 : vector<1x8x128xbf16> to vector<8x128xbf16>
    %124 = vector.shape_cast %121 : vector<8x128xbf16> to vector<1x8x128xbf16>
    tpu.vector_store %arg5[%c3, %c0_36, %c0_37], %124 {strides = array<i32>} : memref<4x8x128xbf16, #tpu.memory_space<vmem>>, vector<1x8x128xbf16>,
    %125 = vector.extract_strided_slice %10 {offsets = [3, 0, 0], sizes = [1, 8, 512], strides = [1, 1, 1]} : vector<4x8x512xf32> to vector<1x8x512xf32>
    %126 = vector.shape_cast %125 : vector<1x8x512xf32> to vector<8x512xf32>
    %127 = arith.truncf %120 : vector<8x128xf32> to vector<8x128xbf16>
    %c0_38 = arith.constant 0 : index
    %c0_39 = arith.constant 0 : index
    %128 = vector.load %arg3[%c0_38, %c0_39] : memref<128x512xbf16, #tpu.memory_space<vmem>>, vector<128x512xbf16>
    %cst_40 = arith.constant dense<0.000000e+00> : vector<8x512xf32>
    %129 = tpu.matmul %127, %128, %cst_40 {dimension_numbers = #tpu.dot_dimension_numbers<[1], [0], [0], [1], [0, 0, 1, 1], [], []>} : vector<8x128xbf16>, vector<128x512xbf16>, vector<8x512xf32> -> vector<8x512xf32>
    %130 = arith.addf %126, %129 : vector<8x512xf32>
    %131 = math.tanh %130 : vector<8x512xf32>
    %132 = vector.extract_strided_slice %131 {offsets = [0, 0], sizes = [8, 128], strides = [1, 1]} : vector<8x512xf32> to vector<8x128xf32>
    %133 = arith.negf %132 : vector<8x128xf32>
    %134 = math.exp %133 : vector<8x128xf32>
    %cst_41 = arith.constant 1.000000e+00 : f32
    %135 = vector.broadcast %cst_41 : f32 to vector<8x128xf32>
    %136 = arith.addf %135, %134 : vector<8x128xf32>
    %137 = arith.divf %135, %136 : vector<8x128xf32>
    %138 = vector.extract_strided_slice %131 {offsets = [0, 128], sizes = [8, 128], strides = [1, 1]} : vector<8x512xf32> to vector<8x128xf32>
    %139 = math.tanh %138 : vector<8x128xf32>
    %140 = vector.extract_strided_slice %131 {offsets = [0, 256], sizes = [8, 128], strides = [1, 1]} : vector<8x512xf32> to vector<8x128xf32>
    %141 = arith.negf %140 : vector<8x128xf32>
    %142 = math.exp %141 : vector<8x128xf32>
    %cst_42 = arith.constant 1.000000e+00 : f32
    %143 = vector.broadcast %cst_42 : f32 to vector<8x128xf32>
    %144 = arith.addf %143, %142 : vector<8x128xf32>
    %145 = arith.divf %143, %144 : vector<8x128xf32>
    %146 = vector.extract_strided_slice %131 {offsets = [0, 384], sizes = [8, 128], strides = [1, 1]} : vector<8x512xf32> to vector<8x128xf32>
    %147 = arith.negf %146 : vector<8x128xf32>
    %148 = math.exp %147 : vector<8x128xf32>
    %cst_43 = arith.constant 1.000000e+00 : f32
    %149 = vector.broadcast %cst_43 : f32 to vector<8x128xf32>
    %150 = arith.addf %149, %148 : vector<8x128xf32>
    %151 = arith.divf %149, %150 : vector<8x128xf32>
    %152 = arith.mulf %137, %118 : vector<8x128xf32>
    %153 = arith.mulf %139, %145 : vector<8x128xf32>
    %154 = arith.addf %152, %153 : vector<8x128xf32>
    %155 = math.tanh %118 : vector<8x128xf32>
    %156 = arith.mulf %151, %155 : vector<8x128xf32>
    %c0_44 = arith.constant 0 : index
    %c0_45 = arith.constant 0 : index
    %157 = vector.load %arg6[%c0_44, %c0_45] : memref<8x128xf32, #tpu.memory_space<vmem>>, vector<8x128xf32>
    tpu.vector_store %arg6[%c0_44, %c0_45], %156 {strides = array<i32>} : memref<8x128xf32, #tpu.memory_space<vmem>>, vector<8x128xf32>,
    %c0_46 = arith.constant 0 : index
    %c0_47 = arith.constant 0 : index
    %158 = vector.load %arg7[%c0_46, %c0_47] : memref<8x128xf32, #tpu.memory_space<vmem>>, vector<8x128xf32>
    tpu.vector_store %arg7[%c0_46, %c0_47], %154 {strides = array<i32>} : memref<8x128xf32, #tpu.memory_space<vmem>>, vector<8x128xf32>,
    return
  }
  func.func @transform_0(%arg0: i32) -> (i32, i32, i32) {
    %c0_i32 = arith.constant 0 : i32
    %c0_i32_0 = arith.constant 0 : i32
    %c0_i32_1 = arith.constant 0 : i32
    return %arg0, %c0_i32, %c0_i32_0 : i32, i32, i32
  }
  func.func @transform_1(%arg0: i32) -> (i32, i32) {
    %c0_i32 = arith.constant 0 : i32
    %c0_i32_0 = arith.constant 0 : i32
    %c0_i32_1 = arith.constant 0 : i32
    return %c0_i32, %c0_i32_0 : i32, i32
  }
  func.func @transform_2(%arg0: i32) -> (i32, i32) {
    %c0_i32 = arith.constant 0 : i32
    %c0_i32_0 = arith.constant 0 : i32
    %c0_i32_1 = arith.constant 0 : i32
    return %c0_i32, %c0_i32_0 : i32, i32
  }
  func.func @transform_3(%arg0: i32) -> (i32, i32) {
    %c0_i32 = arith.constant 0 : i32
    %c0_i32_0 = arith.constant 0 : i32
    %c0_i32_1 = arith.constant 0 : i32
    return %c0_i32, %c0_i32_0 : i32, i32
  }
  func.func @transform_4(%arg0: i32) -> (i32, i32, i32) {
    %c0_i32 = arith.constant 0 : i32
    %c0_i32_0 = arith.constant 0 : i32
    %c0_i32_1 = arith.constant 0 : i32
    return %arg0, %c0_i32, %c0_i32_0 : i32, i32, i32
  }
}

module attributes {stable_mosaic.version = 11 : i64} {
  func.func @affine_softmax_kernel(%arg0: i32, %arg1: memref<32x128xbf16, #tpu.memory_space<vmem>>, %arg2: memref<128x256xbf16, #tpu.memory_space<vmem>>, %arg3: memref<1x256xf32, #tpu.memory_space<vmem>>, %arg4: memref<32x256xf32, #tpu.memory_space<vmem>>) attributes {dimension_semantics = [#tpu.dimension_semantics<parallel>], iteration_bounds = array<i64: 2>, scalar_prefetch = 0 : i64, scratch_operands = 0 : i64, tpu.core_type = #tpu.core_type<tc>, window_params = [{transform_indices = @transform_0, window_bounds = array<i64: 32, 128>}, {pipeline_mode = #tpu.pipeline_mode<synchronous>, transform_indices = @transform_1, window_bounds = array<i64: 128, 256>}, {pipeline_mode = #tpu.pipeline_mode<synchronous>, transform_indices = @transform_2, window_bounds = array<i64: 1, 256>}, {transform_indices = @transform_3, window_bounds = array<i64: 32, 256>}]} {
    %c0 = arith.constant 0 : index
    %c0_0 = arith.constant 0 : index
    %0 = vector.load %arg1[%c0, %c0_0] : memref<32x128xbf16, #tpu.memory_space<vmem>>, vector<32x128xbf16>
    %c0_1 = arith.constant 0 : index
    %c0_2 = arith.constant 0 : index
    %1 = vector.load %arg2[%c0_1, %c0_2] : memref<128x256xbf16, #tpu.memory_space<vmem>>, vector<128x256xbf16>
    %cst = arith.constant dense<0.000000e+00> : vector<32x256xf32>
    %2 = tpu.matmul %0, %1, %cst {dimension_numbers = #tpu.dot_dimension_numbers<[1], [0], [0], [1], [0, 0, 1, 1], [], []>} : vector<32x128xbf16>, vector<128x256xbf16>, vector<32x256xf32> -> vector<32x256xf32>
    %c0_3 = arith.constant 0 : index
    %c0_4 = arith.constant 0 : index
    %3 = vector.load %arg3[%c0_3, %c0_4] : memref<1x256xf32, #tpu.memory_space<vmem>>, vector<1x256xf32>
    %4 = vector.broadcast %3 : vector<1x256xf32> to vector<32x256xf32>
    %5 = arith.addf %2, %4 : vector<32x256xf32>
    %cst_5 = arith.constant dense<0xFF800000> : vector<32xf32>
    %6 = vector.multi_reduction <maximumf>, %5, %cst_5 [1] : vector<32x256xf32> to vector<32xf32>
    %7 = vector.shape_cast %6 : vector<32xf32> to vector<32x1xf32>
    %8 = vector.broadcast %7 : vector<32x1xf32> to vector<32x256xf32>
    %9 = arith.subf %5, %8 : vector<32x256xf32>
    %10 = math.exp %9 : vector<32x256xf32>
    %cst_6 = arith.constant dense<0.000000e+00> : vector<32xf32>
    %11 = vector.multi_reduction <add>, %10, %cst_6 [1] : vector<32x256xf32> to vector<32xf32>
    %12 = vector.shape_cast %11 : vector<32xf32> to vector<32x1xf32>
    %13 = vector.broadcast %12 : vector<32x1xf32> to vector<32x256xf32>
    %14 = arith.divf %10, %13 : vector<32x256xf32>
    %c0_7 = arith.constant 0 : index
    %c0_8 = arith.constant 0 : index
    %15 = vector.load %arg4[%c0_7, %c0_8] : memref<32x256xf32, #tpu.memory_space<vmem>>, vector<32x256xf32>
    tpu.vector_store %arg4[%c0_7, %c0_8], %14 {strides = array<i32>} : memref<32x256xf32, #tpu.memory_space<vmem>>, vector<32x256xf32>,
    return
  }
  func.func @transform_0(%arg0: i32) -> (i32, i32) {
    %c0_i32 = arith.constant 0 : i32
    %c0_i32_0 = arith.constant 0 : i32
    return %arg0, %c0_i32 : i32, i32
  }
  func.func @transform_1(%arg0: i32) -> (i32, i32) {
    %c0_i32 = arith.constant 0 : i32
    %c0_i32_0 = arith.constant 0 : i32
    %c0_i32_1 = arith.constant 0 : i32
    return %c0_i32, %c0_i32_0 : i32, i32
  }
  func.func @transform_2(%arg0: i32) -> (i32, i32) {
    %c0_i32 = arith.constant 0 : i32
    %c0_i32_0 = arith.constant 0 : i32
    %c0_i32_1 = arith.constant 0 : i32
    return %c0_i32, %c0_i32_0 : i32, i32
  }
  func.func @transform_3(%arg0: i32) -> (i32, i32) {
    %c0_i32 = arith.constant 0 : i32
    %c0_i32_0 = arith.constant 0 : i32
    return %arg0, %c0_i32 : i32, i32
  }
}

</mosaic_0001>

<bundles_post_ra>
// kernel: simple_lstm_forward.3
= control target key start
LH: loop header
LB: loop body
LE: loop exit
PB: predicated region body
PF: predicated region fallthrough
CT: control target
= control target key end

     0   :  { %8 = vsyncpa [#allocation3], 0  ;;  %s1029_s0 = inlined_call_operand.vmem [shape: bf16[64,128], index: 0, kind: input, shape index: {}]   ;;  %s1030_s1 = inlined_call_operand.vmem [shape: bf16[128,256], index: 1, kind: input, shape index: {}]   ;;  %s1031_s2 = inlined_call_operand.vmem [shape: f32[1,256], index: 2, kind: input, shape index: {}]   ;;  %s1032_s3 = inlined_call_operand.hbm [shape: f32[64,256], index: 3, kind: output, shape index: {}]  }
   0x1   :  { %10 = vsyncpa [#allocation3 + $0x1], 0  ;;  %s799_s12 = smov 0   ;;  %s801_s13 = smov 0  }
   0x2   :  { %s803_s14 = smov 0   ;;  %s805_s15 = smov 0  }
   0x3 LB: > { %s820_s16 = sadd.s32 4294967295, %s775_s15   ;;  %s527_s17 = sadd.s32 4294967294, %s775_s15   ;;  %s775_s15 = sphi %s805_s15, %s1038_s15   ;;  %s771_s14 = sphi %s803_s14, %s1037_s14   ;;  %s767_s13 = sphi %s801_s13, %s1036_s13   ;;  %s763_s12 = sphi %s799_s12, %s1035_s12  }
   0x4   : > { %s824_s18 = sadd.s32 1, %s775_s15   ;;  %s91_s19 = sadd.s32 1, %s771_s14 }
   0x5   : > { %s88_s20 = ssub.s32 %s775_s15, %s824_s18  ;;  %p101_p0 = scmp.ne.s32.totalorder %s771_s14, %s767_s13 }
   0x6   : > { %p89_p1 = scmp.eq.s32.totalorder %s88_s20, 0  ;;  %p102_p2 = scmp.eq.s32.totalorder %s820_s16, 1 }
   0x7   : > { %p107_p3 = scmp.ne.s32.totalorder %s767_s13, %s763_s12  ;;  %p108_p4 = scmp.eq.s32.totalorder %s527_s17, 1 }
   0x8   : > { %s835_s21 = scalar_select %p89_p1, %s771_s14, %s91_s19  }
   0x9   : > { %p837_p5 = por %p102_p2, %p101_p0  ;;  %p841_p6 = por %p108_p4, %p107_p3 }
   0xa   : > { %p530_p7 = scmp.ge.s32.totalorder %s775_s15, 1  ;;  %p141_p8 = scmp.lt.s32.totalorder %s775_s15, 3 }
   0xc   : > { %p142_p9 = pnand %p530_p7, %p141_p8 }
   0xd   : > { %s532_s28 = sshll.u32 (!%p142_p9), %s820_s16, 2  ;;  %s162_s20 = sand.u32 (!%p142_p9), 1, %s767_s13  }
   0xe   : > { %145 = sbr.rel (%p142_p9) target bundleno = 468 (0x1d4), region = 32  ;;  %p166_p10 = scmp.lt.s32.totalorder (!%p142_p9), %s532_s28, 7 }
   0xf   : > { %s531_s24 = sshll.u32 (!%p142_p9), %s162_s20, 6  ;;  %s631_s26 = sshll.u32 (!%p142_p9), %s820_s16, 6 }
  0x10   : > { %s974_s25 = scalar_lea.vmem (!%p142_p9), [#allocation2], %s531_s24  ;;  %s461_s29 = scalar_lea.hbm (!%p142_p9), %s1032_s3, %s631_s26 }
  0x11   : > { %s462_s30 = sshll.u32 (!%p142_p9), %s974_s25, 4  ;;  %s464_s4 = sshll.u32 (!%p142_p9), %s461_s29, 4  ;;  %s463_s30 = int_to_ptr.vmem [resolvable:$true] %s462_s30  ;;  %s465_s4 = int_to_ptr.hbm [resolvable:$true] %s464_s4 }
  0x12   : > { %s727_s6 = sshra.s32 (!%p142_p9), %s465_s4, 4  ;;  %s733_s10 = scalar_lea.hbm (!%p142_p9), %s1032_s3, 128  ;;  %s728_s6 = int_to_ptr.hbm [resolvable:$true] %s727_s6 }
  0x13   : > { %v600_v0 = vld [vmem:[%s1030_s1 + $0x70] sm:$0xf]  ;;  %v629_v1 = vld [vmem:[%s1030_s1 + $0x74] sm:$0xf0]  ;;  %v628_v2 = vld [vmem:[%s1030_s1 + $0x74] sm:$0xf]  ;;  %p734_p0 = scmp.lt.s32.totalorder %s728_s6, %s1032_s3 }
  0x14   : > { %v601_v3 = vor.u32 %v629_v1, %v600_v0  ;;  %v602_v4 = vld [vmem:[%s1030_s1 + $0x78] sm:$0xf0]  ;;  %v592_v5 = vld [vmem:[%s1030_s1 + $0x60] sm:$0xf]  ;;  %v627_v6 = vld [vmem:[%s1030_s1 + $0x64] sm:$0xf0] }
  0x15   : > { %v605_v7 = vor.u32 %v628_v2, %v602_v4  ;;  %v626_v8 = vld [vmem:[%s1030_s1 + $0x64] sm:$0xf]  ;;  %v594_v9 = vld [vmem:[%s1030_s1 + $0x68] sm:$0xf0]  ;;  %v593_v10 = vor.u32 %v627_v6, %v592_v5  ;;  %v584_v12 = vld [vmem:[%s1030_s1 + $0x50] sm:$0xf] }
  0x16   : > { %290 = vmatpush.bf16.msra.mxu0 %v601_v3  ;;  %632 = vmatpush.bf16.msra.mxu2 %v601_v3  ;;  %v597_v11 = vor.u32 %v626_v8, %v594_v9  ;;  %v625_v13 = vld [vmem:[%s1030_s1 + $0x54] sm:$0xf0]  ;;  %v624_v14 = vld [vmem:[%s1030_s1 + $0x54] sm:$0xf]  ;;  %v586_v15 = vld [vmem:[%s1030_s1 + $0x58] sm:$0xf0] }
  0x17   : > { %309 = vmatpush.bf16.msra.mxu1 %v605_v7  ;;  %640 = vmatpush.bf16.msra.mxu3 %v605_v7  ;;  %v585_v16 = vor.u32 %v625_v13, %v584_v12  ;;  %v589_v17 = vor.u32 %v624_v14, %v586_v15  ;;  %v576_v18 = vld [vmem:[%s1030_s1 + $0x40] sm:$0xf]  ;;  %v623_v19 = vld [vmem:[%s1030_s1 + $0x44] sm:$0xf0]  ;;  %v622_v20 = vld [vmem:[%s1030_s1 + $0x44] sm:$0xf] }
  0x18   : > { %v578_v21 = vld [vmem:[%s1030_s1 + $0x48] sm:$0xf0]  ;;  %v577_v22 = vor.u32 %v623_v19, %v576_v18  ;;  %v568_v24 = vld [vmem:[%s1030_s1 + $0x30] sm:$0xf]  ;;  %v621_v25 = vld [vmem:[%s1030_s1 + $0x34] sm:$0xf0] }
  0x19   : > { %v581_v23 = vor.u32 %v622_v20, %v578_v21  ;;  %v620_v26 = vld [vmem:[%s1030_s1 + $0x34] sm:$0xf]  ;;  %v570_v27 = vld [vmem:[%s1030_s1 + $0x38] sm:$0xf0]  ;;  %v569_v28 = vor.u32 %v621_v25, %v568_v24  ;;  %v560_v30 = vld [vmem:[%s1030_s1 + $0x20] sm:$0xf] }
  0x1a   : > { %291 = vmatpush.bf16.msra.mxu0 %v593_v10  ;;  %633 = vmatpush.bf16.msra.mxu2 %v593_v10  ;;  %v573_v29 = vor.u32 %v620_v26, %v570_v27  ;;  %v619_v31 = vld [vmem:[%s1030_s1 + $0x24] sm:$0xf0]  ;;  %v618_v32 = vld [vmem:[%s1030_s1 + $0x24] sm:$0xf]  ;;  %v562_v33 = vld [vmem:[%s1030_s1 + $0x28] sm:$0xf0] }
  0x1b   : > { %310 = vmatpush.bf16.msra.mxu1 %v597_v11  ;;  %641 = vmatpush.bf16.msra.mxu3 %v597_v11  ;;  %v561_v34 = vor.u32 %v619_v31, %v560_v30  ;;  %v565_v35 = vor.u32 %v618_v32, %v562_v33  ;;  %v552_v36 = vld [vmem:[%s1030_s1 + $0x10] sm:$0xf]  ;;  %v617_v37 = vld [vmem:[%s1030_s1 + $0x14] sm:$0xf0]  ;;  %s1040_s28 = smov (!%p166_p10, %s532_s28), 7  ;;  %s729_s7 = scalar_lea.hbm %s728_s6, 64 }
  0x1c   : > { %v616_v38 = vld [vmem:[%s1030_s1 + $0x14] sm:$0xf]  ;;  %v554_v39 = vld [vmem:[%s1030_s1 + $0x18] sm:$0xf0]  ;;  %v553_v40 = vor.u32 %v617_v37, %v552_v36  ;;  %v544_v42 = vld [vmem:[%s1030_s1] sm:$0xf]  ;;  %p730_p11 = scmp.ne.s32.totalorder %s728_s6, %s729_s7  ;;  %p735_p1 = scmp.lt.s32.totalorder %s733_s10, %s729_s7 }
  0x1d   : > { %v557_v41 = vor.u32 %v616_v38, %v554_v39  ;;  %v615_v43 = vld [vmem:[%s1030_s1 + $0x4] sm:$0xf0]  ;;  %s533_s5 = sshll.u32 %s1040_s28, 2  ;;  %v614_v44 = vld [vmem:[%s1030_s1 + $0x4] sm:$0xf] }
  0x1e   : > { %292 = vmatpush.bf16.msra.mxu0 %v585_v16  ;;  %634 = vmatpush.bf16.msra.mxu2 %v585_v16  ;;  %v546_v45 = vld [vmem:[%s1030_s1 + $0x8] sm:$0xf0]  ;;  %v545_v46 = vor.u32 %v615_v43, %v544_v42  ;;  %s169_s17 = scalar_lea.vmem %s1029_s0, %s533_s5  ;;  %v192_v50 = vld [vmem:[%s1031_s2] sm:$0x3]  ;;  %s449_s5 = scalar_lea.sflag [#allocation3], %s162_s20 }
  0x1f   : > { %311 = vmatpush.bf16.msra.mxu1 %v589_v17  ;;  %642 = vmatpush.bf16.msra.mxu3 %v589_v17  ;;  %v549_v47 = vor.u32 %v614_v44, %v546_v45  ;;  %v612_v48 = vld [vmem:[%s169_s17] sm:$0xff]  ;;  %v613_v49 = vld [vmem:[%s169_s17 + $0x8] sm:$0xff]  ;;  %v194_v51 = vperm.slane %v192_v50, 0  ;;  %v195_v52 = vperm.slane %v192_v50, 1  ;;  %p731_p12 = pnand %p730_p11, %p837_p5  ;;  %p736_p2 = por %p735_p1, %p734_p0 }
  0x21   : > { %p732_p13 = pneg %p731_p12 }
  0x22   : > { %293 = vmatpush.bf16.msra.mxu0 %v577_v22  ;;  %635 = vmatpush.bf16.msra.mxu2 %v577_v22 }
  0x23   : > { %312 = vmatpush.bf16.msra.mxu1 %v581_v23  ;;  %643 = vmatpush.bf16.msra.mxu3 %v581_v23  ;;  %p737_p3 = pnand %p736_p2, %p732_p13 }
  0x26   : > { %294 = vmatpush.bf16.msra.mxu0 %v569_v28  ;;  %636 = vmatpush.bf16.msra.mxu2 %v569_v28 }
  0x27   : > { %313 = vmatpush.bf16.msra.mxu1 %v573_v29  ;;  %644 = vmatpush.bf16.msra.mxu3 %v573_v29 }
  0x2a   : > { %295 = vmatpush.bf16.msra.mxu0 %v561_v34  ;;  %637 = vmatpush.bf16.msra.mxu2 %v561_v34 }
  0x2b   : > { %314 = vmatpush.bf16.msra.mxu1 %v565_v35  ;;  %645 = vmatpush.bf16.msra.mxu3 %v565_v35 }
  0x2e   : > { %296 = vmatpush.bf16.msra.mxu0 %v553_v40  ;;  %638 = vmatpush.bf16.msra.mxu2 %v553_v40 }
  0x2f   : > { %315 = vmatpush.bf16.msra.mxu1 %v557_v41  ;;  %646 = vmatpush.bf16.msra.mxu3 %v557_v41 }
  0x32   : > { %297 = vmatpush.bf16.msra.mxu0 %v545_v46  ;;  %639 = vmatpush.bf16.msra.mxu2 %v545_v46 }
  0x33   : > { %316 = vmatpush.bf16.msra.mxu1 %v549_v47  ;;  %647 = vmatpush.bf16.msra.mxu3 %v549_v47 }
  0x35   : > { %298 = vmatmul.bf16.vlgmr.msra.gmra.mxu0 %v612_v48  ;;  %303 = vmatmul.bf16.vlgmr.msra.gmra.mxu2 %v613_v49 }
  0x36   : > { %317 = vmatmul.bf16.vlgmr.msra.gmra.mxu1 %v612_v48  ;;  %322 = vmatmul.bf16.vlgmr.msra.gmra.mxu3 %v613_v49 }
  0xb2   : > { %v299_v53 = vpop.f32.mrf.mxu0 }
  0xb3   : > { %v300_v54 = vadd.f32 %v299_v53, %v194_v51  ;;  %v318_v55 = vpop.f32.mrf.mxu1 }
  0xb4   : > { %v319_v56 = vadd.f32 %v318_v55, %v195_v52 }
  0xb6   : > { %v328_v57 = vmax.f32 %v300_v54, %v319_v56 }
  0xb8   : > { %329 = vmax.xlane.f32.xlu0 %v328_v57  ;;  %v304_v58 = vpop.f32.mrf.mxu2 }
  0xb9   : > { %v305_v59 = vadd.f32 %v304_v58, %v194_v51  ;;  %v323_v60 = vpop.f32.mrf.mxu3 }
  0xba   : > { %v324_v61 = vadd.f32 %v323_v60, %v195_v52  ;;  %v301_v62 = vpop.f32.mrf.mxu0 }
  0xbb   : > { %v302_v63 = vadd.f32 %v301_v62, %v194_v51  ;;  %v320_v0 = vpop.f32.mrf.mxu1 }
  0xbc   : > { %v321_v1 = vadd.f32 %v320_v0, %v195_v52  ;;  %v334_v2 = vmax.f32 %v305_v59, %v324_v61 }
  0xbe   : > { %335 = vmax.xlane.f32.xlu1 %v334_v2  ;;  %v331_v3 = vmax.f32 %v302_v63, %v321_v1 }
  0xc0   : > { %332 = vmax.xlane.f32.xlu0 %v331_v3  ;;  %v306_v4 = vpop.f32.mrf.mxu2 }
  0xc1   : > { %v307_v5 = vadd.f32 %v306_v4, %v194_v51  ;;  %v325_v6 = vpop.f32.mrf.mxu3 }
  0xc2   : > { %v326_v7 = vadd.f32 %v325_v6, %v195_v52 }
  0xc4   : > { %v337_v8 = vmax.f32 %v307_v5, %v326_v7 }
  0xc6   : > { %338 = vmax.xlane.f32.xlu1 %v337_v8 }
 0x12b   : > { %v330_v9 = vpop.xlane.xlu0 %329 }
 0x12c   : > { %v340_v10 = vsub.f32 %v300_v54, %v330_v9  ;;  %v341_v11 = vsub.f32 %v319_v56, %v330_v9 }
 0x12e   : > { %v348_v12 = vmul.f32 1.442695, %v340_v10  ;;  %v350_v13 = vmul.f32 1.442695, %v341_v11 }
 0x130   : > { %689 = vpow2.f32 %v348_v12 }
 0x131   : > { %691 = vpow2.f32 %v350_v13  ;;  %v336_v14 = vpop.xlane.xlu1 %335 }
 0x132   : > { %v344_v15 = vsub.f32 %v305_v59, %v336_v14  ;;  %v345_v16 = vsub.f32 %v324_v61, %v336_v14 }
 0x133   : > { %v333_v17 = vpop.xlane.xlu0 %332 }
 0x134   : > { %v356_v18 = vmul.f32 1.442695, %v344_v15  ;;  %v358_v19 = vmul.f32 1.442695, %v345_v16  ;;  %v342_v20 = vsub.f32 %v302_v63, %v333_v17  ;;  %v343_v21 = vsub.f32 %v321_v1, %v333_v17 }
 0x136   : > { %v690_v22 = vpop.eup %689  ;;  %693 = vpow2.f32 %v356_v18  ;;  %v352_v23 = vmul.f32 1.442695, %v342_v20  ;;  %v354_v24 = vmul.f32 1.442695, %v343_v21 }
 0x137   : > { %v692_v25 = vpop.eup %691  ;;  %695 = vpow2.f32 %v358_v19 }
 0x138   : > { %697 = vpow2.f32 %v352_v23  ;;  %v364_v26 = vadd.f32 %v692_v25, %v690_v22 }
 0x139   : > { %699 = vpow2.f32 %v354_v24  ;;  %v339_v27 = vpop.xlane.xlu1 %338 }
 0x13a   : > { %v346_v28 = vsub.f32 %v307_v5, %v339_v27  ;;  %v347_v29 = vsub.f32 %v326_v7, %v339_v27  ;;  %365 = vadd.xlane.f32.xlu2 %v364_v26 }
 0x13c   : > { %v950_v30 = vpop.eup %693  ;;  %v360_v31 = vmul.f32 1.442695, %v346_v28  ;;  %v362_v32 = vmul.f32 1.442695, %v347_v29 }
 0x13d   : > { %v952_v33 = vpop.eup %695 }
 0x13e   : > { %v954_v34 = vpop.eup %697  ;;  %701 = vpow2.f32 %v360_v31  ;;  %v370_v35 = vadd.f32 %v952_v33, %v950_v30 }
 0x13f   : > { %v958_v36 = vpop.eup %699  ;;  %703 = vpow2.f32 %v362_v32 }
 0x140   : > { %371 = vadd.xlane.f32.xlu0 %v370_v35  ;;  %v367_v37 = vadd.f32 %v958_v36, %v954_v34 }
 0x142   : > { %368 = vadd.xlane.f32.xlu2 %v367_v37 }
 0x144   : > { %v962_v38 = vpop.eup %701 }
 0x145   : > { %v964_v39 = vpop.eup %703 }
 0x146   : > { %v373_v40 = vadd.f32 %v964_v39, %v962_v38 }
 0x148   : > { %374 = vadd.xlane.f32.xlu1 %v373_v40 }
 0x1ad   : > { %v366_v41 = vpop.xlane.xlu2 %365 }
 0x1ae   : > { %705 = vrcp.f32 %v366_v41  ;;  %v387_v47 = vand.u32 2147483648, %v366_v41  ;;  %v385_v49 = vand.u32 2147483647, %v366_v41  ;;  %vm381_vm1 = vweird.f32 %v366_v41 }
 0x1b0   : > { %v388_v55 = vor.u32 1.1754944e-38, %v387_v47  ;;  %vm386_vm3 = vcmp.eq.f32.partialorder %v385_v49, 8.507059e+37 }
 0x1b3   : > { %v372_v42 = vpop.xlane.xlu0 %371 }
 0x1b4   : > { %v706_v43 = vpop.eup %705  ;;  %707 = vrcp.f32 %v372_v42  ;;  %v417_v60 = vand.u32 2147483647, %v372_v42  ;;  %v419_v61 = vand.u32 2147483648, %v372_v42  ;;  %vm413_vm5 = vweird.f32 %v372_v42 }
 0x1b5   : > { %v377_v44 = vmul.f32 %v706_v43, %v366_v41  ;;  %v369_v45 = vpop.xlane.xlu2 %368  ;;  %vm382_vm0 = vweird.f32 %v706_v43 }
 0x1b6   : > { %709 = vrcp.f32 %v369_v45  ;;  %vm383_vm2 = vmor %vm381_vm1, %vm382_vm0  ;;  %v401_v2 = vand.u32 2147483647, %v369_v45  ;;  %v403_v3 = vand.u32 2147483648, %v369_v45  ;;  %vm418_vm8 = vcmp.eq.f32.partialorder %v417_v60, 8.507059e+37 }
 0x1b7   : > { %v378_v46 = vsub.f32 1.0, %v377_v44  ;;  %v420_v7 = vor.u32 1.1754944e-38, %v419_v61  ;;  %vm397_vm9 = vweird.f32 %v369_v45 }
 0x1b8   : > { %vm402_vm11 = vcmp.eq.f32.partialorder %v401_v2, 8.507059e+37  ;;  %v404_v12 = vor.u32 1.1754944e-38, %v403_v3 }
 0x1b9   : > { %v379_v48 = vmul.f32 %v706_v43, %v378_v46 }
 0x1ba   : > { %v708_v50 = vpop.eup %707 }
 0x1bb   : > { %v380_v51 = vadd.f32 %v706_v43, %v379_v48  ;;  %v409_v52 = vmul.f32 %v708_v50, %v372_v42  ;;  %v971_v53 = vpop.xlane.xlu1 %374  ;;  %vm414_vm4 = vweird.f32 %v708_v50 }
 0x1bc   : > { %v710_v54 = vpop.eup %709  ;;  %711 = vrcp.f32 %v971_v53  ;;  %vm415_vm7 = vmor %vm413_vm5, %vm414_vm4  ;;  %v433_v18 = vand.u32 2147483647, %v971_v53  ;;  %v435_v19 = vand.u32 2147483648, %v971_v53  ;;  %vm429_vm13 = vweird.f32 %v971_v53 }
 0x1bd   : > { %v384_v56 = vsel %vm383_vm2, %v706_v43, %v380_v51  ;;  %v410_v57 = vsub.f32 1.0, %v409_v52  ;;  %v393_v58 = vmul.f32 %v710_v54, %v369_v45  ;;  %vm398_vm6 = vweird.f32 %v710_v54 }
 0x1be   : > { %v389_v59 = vsel %vm386_vm3, %v388_v55, %v384_v56  ;;  %vm399_vm10 = vmor %vm397_vm9, %vm398_vm6  ;;  %v436_v24 = vor.u32 1.1754944e-38, %v435_v19  ;;  %vm434_vm15 = vcmp.eq.f32.partialorder %v433_v18, 8.507059e+37 }
 0x1bf   : > { %v390_v62 = vmul.f32 %v690_v22, %v389_v59  ;;  %v391_v63 = vmul.f32 %v692_v25, %v389_v59  ;;  %v411_v0 = vmul.f32 %v708_v50, %v410_v57  ;;  %v394_v1 = vsub.f32 1.0, %v393_v58 }
 0x1c1   : > { %440 = vst [vmem:[%s974_s25] sm:$0xff] %v390_v62  ;;  %v412_v4 = vadd.f32 %v708_v50, %v411_v0  ;;  %v395_v5 = vmul.f32 %v710_v54, %v394_v1 }
 0x1c2   : > { %v712_v6 = vpop.eup %711  ;;  %441 = vst [vmem:[%s974_s25 + $0x8] sm:$0xff] %v391_v63 }
 0x1c3   : > { %v416_v8 = vsel %vm415_vm7, %v708_v50, %v412_v4  ;;  %v396_v9 = vadd.f32 %v710_v54, %v395_v5  ;;  %v425_v10 = vmul.f32 %v712_v6, %v971_v53  ;;  %vm430_vm12 = vweird.f32 %v712_v6 }
 0x1c4   : > { %v421_v11 = vsel %vm418_vm8, %v420_v7, %v416_v8  ;;  %vm431_vm14 = vmor %vm429_vm13, %vm430_vm12 }
 0x1c5   : > { %v422_v13 = vmul.f32 %v950_v30, %v421_v11  ;;  %v423_v14 = vmul.f32 %v952_v33, %v421_v11  ;;  %v400_v15 = vsel %vm399_vm10, %v710_v54, %v396_v9  ;;  %v426_v16 = vsub.f32 1.0, %v425_v10 }
 0x1c6   : > { %v405_v17 = vsel %vm402_vm11, %v404_v12, %v400_v15 }
 0x1c7   : > { %444 = vst [vmem:[%s974_s25 + $0x20] sm:$0xff] %v422_v13  ;;  %v406_v20 = vmul.f32 %v954_v34, %v405_v17  ;;  %v407_v21 = vmul.f32 %v958_v36, %v405_v17  ;;  %v427_v22 = vmul.f32 %v712_v6, %v426_v16 }
 0x1c8   : > { %445 = vst [vmem:[%s974_s25 + $0x28] sm:$0xff] %v423_v14 }
 0x1c9   : > { %442 = vst [vmem:[%s974_s25 + $0x10] sm:$0xff] %v406_v20  ;;  %v428_v23 = vadd.f32 %v712_v6, %v427_v22 }
 0x1ca   : > { %443 = vst [vmem:[%s974_s25 + $0x18] sm:$0xff] %v407_v21 }
 0x1cb   : > { %v432_v25 = vsel %vm431_vm14, %v712_v6, %v428_v23 }
 0x1cc   : > { %v437_v26 = vsel %vm434_vm15, %v436_v24, %v432_v25 }
 0x1cd   : > { %v438_v27 = vmul.f32 %v962_v38, %v437_v26  ;;  %v439_v28 = vmul.f32 %v964_v39, %v437_v26 }
 0x1cf   : > { %446 = vst [vmem:[%s974_s25 + $0x30] sm:$0xff] %v438_v27 }
 0x1d0   : > { %447 = vst [vmem:[%s974_s25 + $0x38] sm:$0xff] %v439_v28 }
 0x1d1   : > { %740 = shalt.err (!%p737_p3)
}
 0x1d2   : > { %s777_s28 = smov 256   ;;  %s778_s19 = smov 16  }
 0x1d3   : > { %648 = dma.vmem_to_hbm [thread:$0]  (%p837_p5), %s463_s30, 1024, %s465_s4, %s449_s5, %s777_s28, %s777_s28, %s778_s19  }
 0x1d4 PF: > { %p654_p4 = scmp.ge.s32.totalorder %s775_s15, 2  ;;  %s479_s20 = sand.u32 1, %s763_s12  }
 0x1d5   : > { %s480_s24 = scalar_lea.sflag [#allocation3], %s479_s20 }
 0x1d6   : > { %p651_p7 = pnand %p654_p4, %p841_p6 }
 0x1d8   : > { %p652_p8 = pneg %p651_p7 }
 0x1da   : > { %758 = dma.done.wait (%p652_p8), %s480_s24, 1024  }
 0x1db   : > { %760 = vsyncadd (%p652_p8), %s480_s24, 4294966272  ;;  %p13_p9 = scmp.ge.s32.totalorder %s824_s18, 4   ;;  %s1035_s12 = smov %s767_s13 }
 0x1dc   : > { %s1036_s13 = smov %s771_s14  ;;  %s1037_s14 = smov %s835_s21 }
 0x1dd   : > { %s1038_s15 = smov %s824_s18  ;;  %15 = sbr.rel (!%p13_p9) target bundleno = 3 (0x3), region = 67 }
 0x1e2   :  { %486 = vsyncpa [#allocation3], 1 }
 0x1e3   :  { %488 = vsyncpa [#allocation3 + $0x1], 1 }

// kernel: simple_lstm_forward.2
= control target key start
LH: loop header
LB: loop body
LE: loop exit
PB: predicated region body
PF: predicated region fallthrough
CT: control target
= control target key end

     0   :  { %9 = vsyncpa [#allocation5], 0  ;;  %s2889_s15 = smov 0   ;;  %s3220_s0 = inlined_call_operand.vmem [shape: bf16[8,8,128], index: 0, kind: input, shape index: {}]   ;;  %s3221_s1 = inlined_call_operand.vmem [shape: bf16[128,512], index: 1, kind: input, shape index: {}]   ;;  %s3222_s2 = inlined_call_operand.hbm [shape: bf16[128,512], index: 2, kind: input, shape index: {}]   ;;  %s3223_s3 = inlined_call_operand.vmem [shape: f32[1,512], index: 3, kind: input, shape index: {}]   ;;  %s3224_s4 = inlined_call_operand.vmem [shape: bf16[8,8,128], index: 4, kind: output, shape index: {}]  }
   0x1 LB: > { %s149_s18 = sshll.u32 %s3222_s2, 4  ;;  %s1861_s19 = sadd.s32 4294967295, %s2858_s15   ;;  %s2858_s15 = sphi %s2889_s15, %s15_s15   ;;  %s150_s18 = int_to_ptr.hbm [resolvable:$true] %s149_s18 }
   0x2   : > { %p1863_p0 = scmp.ge.s32.totalorder %s2858_s15, 1  ;;  %p135_p1 = scmp.lt.s32.totalorder %s2858_s15, 3 }
   0x3   : > { %p1864_p2 = scmp.ne.s32.totalorder %s1861_s19, 0  ;;  %p2708_p3 = scmp.eq.s32.totalorder %s1861_s19, 0 }
   0x4   : > { %p136_p4 = pnand %p1863_p0, %p135_p1  ;;  %s2860_s20 = smov [#allocation4]  }
   0x5   : > { %s151_s21 = sshll.u32 %s2860_s20, 4  ;;  %s2861_s22 = smov 256   ;;  %s152_s21 = int_to_ptr.vmem [resolvable:$true] %s151_s21 }
   0x6   : > { %p2704_p5 = pneg %p136_p4  ;;  %s2862_s23 = smov 16  }
   0x7   : > { %179 = sbr.rel (%p136_p4) target bundleno = 791 (0x317), region = 36 }
   0x8   : > { %p2705_p6 = pnand %p2708_p3, %p2704_p5 }
   0xa   : > { %2707 = dma.hbm_to_vmem [thread:$0]  (!%p2705_p6), %s150_s18, 4096, %s152_s21, [#allocation5], %s2861_s22, %s2861_s22, %s2862_s23  }
   0xc   : > { %2853 = dma.done.wait (%p2708_p3), [#allocation5], 4096  }
   0xd   : > { %2855 = vsyncadd (%p2708_p3), [#allocation5], 4294963200  ;;  %s1868_s24 = sshll.u32 %s1861_s19, 2 }
   0xe   : > { %p207_p7 = scmp.lt.s32.totalorder %s1868_s24, 7  ;;  %221 = sbr.rel (%p1864_p2) target bundleno = 22 (0x16), region = 44 }
  0x10   : > { %s3230_s24 = smov (!%p207_p7, %s1868_s24), 7 }
  0x11   : > { %s1869_s25 = sshll.u32 %s3230_s24, 2 }
  0x12   : > { %s2903_s28 = scalar_lea.vmem %s3220_s0, %s1869_s25  ;;  %s2908_s5 = scalar_lea.vmem %s3224_s4, %s1869_s25 }
  0x13   : > { %v2863_v0 = vmov 0.0  }
  0x14   : > { %222 = vst [vmem:[#allocation2] sm:$0xff] %v2863_v0 }
  0x15   : > { %223 = vst [vmem:[#allocation3] sm:$0xff] %v2863_v0 }
  0x16 PF: > { %v2569_v1 = vld [vmem:[%s3221_s1 + $0xec] sm:$0xf]  ;;  %v2005_v2 = vld [vmem:[%s3221_s1 + $0xf8] sm:$0xf0]  ;;  %v2962_v32 = vld [vmem:[%s2903_s28] sm:$0xff] }
  0x17   : > { %v2565_v3 = vld [vmem:[%s3221_s1 + $0xcc] sm:$0xf]  ;;  %v2008_v4 = vor.u32 %v2569_v1, %v2005_v2  ;;  %v1989_v5 = vld [vmem:[%s3221_s1 + $0xd8] sm:$0xf0]  ;;  %v2003_v36 = vld [vmem:[%s3221_s1 + $0xe8] sm:$0xf] }
  0x18   : > { %v1992_v6 = vor.u32 %v2565_v3, %v1989_v5  ;;  %v2561_v7 = vld [vmem:[%s3221_s1 + $0xac] sm:$0xf]  ;;  %v1973_v8 = vld [vmem:[%s3221_s1 + $0xb8] sm:$0xf0]  ;;  %v2571_v37 = vld [vmem:[%s3221_s1 + $0xf4] sm:$0xf0] }
  0x19   : > { %499 = vmatpush.bf16.msra.mxu3 %v2008_v4  ;;  %v1976_v9 = vor.u32 %v2561_v7, %v1973_v8  ;;  %v2557_v10 = vld [vmem:[%s3221_s1 + $0x8c] sm:$0xf]  ;;  %v1957_v11 = vld [vmem:[%s3221_s1 + $0x98] sm:$0xf0]  ;;  %v1987_v38 = vld [vmem:[%s3221_s1 + $0xc8] sm:$0xf]  ;;  %v2004_v39 = vor.u32 %v2571_v37, %v2003_v36 }
  0x1a   : > { %v1960_v12 = vor.u32 %v2557_v10, %v1957_v11  ;;  %v2553_v13 = vld [vmem:[%s3221_s1 + $0x6c] sm:$0xf]  ;;  %v1941_v14 = vld [vmem:[%s3221_s1 + $0x78] sm:$0xf0]  ;;  %v2567_v40 = vld [vmem:[%s3221_s1 + $0xd4] sm:$0xf0] }
  0x1b   : > { %v1944_v15 = vor.u32 %v2553_v13, %v1941_v14  ;;  %v2549_v16 = vld [vmem:[%s3221_s1 + $0x4c] sm:$0xf]  ;;  %v1925_v17 = vld [vmem:[%s3221_s1 + $0x58] sm:$0xf0]  ;;  %v518_v28 = vld [vmem:[#allocation2] sm:$0xff]  ;;  %480 = vmatpush.bf16.msra.mxu2 %v2004_v39  ;;  %v1988_v48 = vor.u32 %v2567_v40, %v1987_v38 }
  0x1c   : > { %v1928_v18 = vor.u32 %v2549_v16, %v1925_v17  ;;  %v2545_v19 = vld [vmem:[%s3221_s1 + $0x2c] sm:$0xf]  ;;  %v1909_v20 = vld [vmem:[%s3221_s1 + $0x38] sm:$0xf0]  ;;  %v2959_v31 = vpack.c.bf16 %v518_v28, %v518_v28  ;;  %v1995_v41 = vld [vmem:[%s3221_s1 + $0xe0] sm:$0xf] }
  0x1d   : > { %500 = vmatpush.bf16.msra.mxu3 %v1992_v6  ;;  %v1912_v21 = vor.u32 %v2545_v19, %v1909_v20  ;;  %v2541_v22 = vld [vmem:[%s3221_s1 + $0xc] sm:$0xf]  ;;  %v1893_v23 = vld [vmem:[%s3221_s1 + $0x18] sm:$0xf0]  ;;  %v2570_v42 = vld [vmem:[%s3221_s1 + $0xec] sm:$0xf0] }
  0x1e   : > { %v2601_v24 = vld [vmem:[#allocation4 + $0xec] sm:$0xf]  ;;  %v2133_v25 = vld [vmem:[#allocation4 + $0xf8] sm:$0xf0]  ;;  %v1896_v26 = vor.u32 %v2541_v22, %v1893_v23  ;;  %521 = vst [vmem:[%s2908_s5] sm:$0xf] %v2959_v31  ;;  %v1996_v44 = vor.u32 %v2570_v42, %v1995_v41 }
  0x1f   : > { %v2136_v27 = vor.u32 %v2601_v24, %v2133_v25  ;;  %v2597_v29 = vld [vmem:[#allocation4 + $0xcc] sm:$0xf]  ;;  %v2117_v30 = vld [vmem:[#allocation4 + $0xd8] sm:$0xf0]  ;;  %v1979_v45 = vld [vmem:[%s3221_s1 + $0xc0] sm:$0xf]  ;;  %481 = vmatpush.bf16.msra.mxu2 %v1988_v48 }
  0x20   : > { %v2120_v33 = vor.u32 %v2597_v29, %v2117_v30  ;;  %v2593_v34 = vld [vmem:[#allocation4 + $0xac] sm:$0xf]  ;;  %v2101_v35 = vld [vmem:[#allocation4 + $0xb8] sm:$0xf0]  ;;  %v2566_v49 = vld [vmem:[%s3221_s1 + $0xcc] sm:$0xf0]  ;;  %442 = vmatpush.bf16.msra.mxu0 %v1996_v44 }
  0x21   : > { %501 = vmatpush.bf16.msra.mxu3 %v1976_v9  ;;  %v2104_v43 = vor.u32 %v2593_v34, %v2101_v35  ;;  %v2589_v46 = vld [vmem:[#allocation4 + $0x8c] sm:$0xf]  ;;  %v2085_v47 = vld [vmem:[#allocation4 + $0x98] sm:$0xf0]  ;;  %v1971_v50 = vld [vmem:[%s3221_s1 + $0xa8] sm:$0xf]  ;;  %v1980_v52 = vor.u32 %v2566_v49, %v1979_v45 }
  0x22   : > { %v2563_v51 = vld [vmem:[%s3221_s1 + $0xb4] sm:$0xf0]  ;;  %v1963_v53 = vld [vmem:[%s3221_s1 + $0xa0] sm:$0xf]  ;;  %v2562_v54 = vld [vmem:[%s3221_s1 + $0xac] sm:$0xf0]  ;;  %v2088_v55 = vor.u32 %v2589_v46, %v2085_v47 }
  0x23   : > { %v2585_v56 = vld [vmem:[#allocation4 + $0x6c] sm:$0xf]  ;;  %v2069_v57 = vld [vmem:[#allocation4 + $0x78] sm:$0xf0]  ;;  %v1972_v58 = vor.u32 %v2563_v51, %v1971_v50  ;;  %v1955_v59 = vld [vmem:[%s3221_s1 + $0x88] sm:$0xf]  ;;  %v1964_v61 = vor.u32 %v2562_v54, %v1963_v53 }
  0x24   : > { %443 = vmatpush.bf16.msra.mxu0 %v1980_v52  ;;  %v2559_v60 = vld [vmem:[%s3221_s1 + $0x94] sm:$0xf0]  ;;  %v2568_v62 = vld [vmem:[%s3221_s1 + $0xe4] sm:$0xf]  ;;  %v1947_v63 = vld [vmem:[%s3221_s1 + $0x80] sm:$0xf]  ;;  %v2072_v2 = vor.u32 %v2585_v56, %v2069_v57 }
  0x25   : > { %502 = vmatpush.bf16.msra.mxu3 %v1960_v12  ;;  %v2558_v0 = vld [vmem:[%s3221_s1 + $0x8c] sm:$0xf0]  ;;  %v1997_v1 = vld [vmem:[%s3221_s1 + $0xf0] sm:$0xf0]  ;;  %v2564_v4 = vld [vmem:[%s3221_s1 + $0xc4] sm:$0xf]  ;;  %482 = vmatpush.bf16.msra.mxu2 %v1972_v58  ;;  %v1956_v7 = vor.u32 %v2559_v60, %v1955_v59 }
  0x26   : > { %v2000_v3 = vor.u32 %v2568_v62, %v1997_v1  ;;  %v2581_v5 = vld [vmem:[#allocation4 + $0x4c] sm:$0xf]  ;;  %v2053_v6 = vld [vmem:[#allocation4 + $0x58] sm:$0xf0]  ;;  %v1981_v8 = vld [vmem:[%s3221_s1 + $0xd0] sm:$0xf0]  ;;  %v1948_v12 = vor.u32 %v2558_v0, %v1947_v63 }
  0x27   : > { %v3028_v9 = vld [vmem:[%s2903_s28 + $0x8] sm:$0xff]  ;;  %v2555_v11 = vld [vmem:[%s3221_s1 + $0x74] sm:$0xf0]  ;;  %v1931_v13 = vld [vmem:[%s3221_s1 + $0x60] sm:$0xf]  ;;  %v2056_v16 = vor.u32 %v2581_v5, %v2053_v6 }
  0x28   : > { %444 = vmatpush.bf16.msra.mxu0 %v1964_v61  ;;  %v1939_v10 = vld [vmem:[%s3221_s1 + $0x68] sm:$0xf]  ;;  %461 = vmatpush.bf16.msra.mxu1 %v2000_v3  ;;  %v2554_v14 = vld [vmem:[%s3221_s1 + $0x6c] sm:$0xf0]  ;;  %v2560_v17 = vld [vmem:[%s3221_s1 + $0xa4] sm:$0xf] }
  0x29   : > { %503 = vmatpush.bf16.msra.mxu3 %v1944_v15  ;;  %v1984_v15 = vor.u32 %v2564_v4, %v1981_v8  ;;  %v2577_v19 = vld [vmem:[#allocation4 + $0x2c] sm:$0xf]  ;;  %v2037_v20 = vld [vmem:[#allocation4 + $0x38] sm:$0xf0]  ;;  %483 = vmatpush.bf16.msra.mxu2 %v1956_v7  ;;  %v1923_v22 = vld [vmem:[%s3221_s1 + $0x48] sm:$0xf]  ;;  %v1932_v24 = vor.u32 %v2554_v14, %v1931_v13 }
  0x2a   : > { %v2551_v23 = vld [vmem:[%s3221_s1 + $0x54] sm:$0xf0]  ;;  %v1915_v25 = vld [vmem:[%s3221_s1 + $0x40] sm:$0xf]  ;;  %v2040_v28 = vor.u32 %v2577_v19, %v2037_v20  ;;  %v2556_v29 = vld [vmem:[%s3221_s1 + $0x84] sm:$0xf] }
  0x2b   : > { %v1949_v30 = vld [vmem:[%s3221_s1 + $0x90] sm:$0xf0]  ;;  %v2021_v34 = vld [vmem:[#allocation4 + $0x18] sm:$0xf0]  ;;  %v1924_v35 = vor.u32 %v2551_v23, %v1923_v22  ;;  %v1907_v36 = vld [vmem:[%s3221_s1 + $0x28] sm:$0xf] }
  0x2c   : > { %445 = vmatpush.bf16.msra.mxu0 %v1948_v12  ;;  %462 = vmatpush.bf16.msra.mxu1 %v1984_v15  ;;  %v2547_v37 = vld [vmem:[%s3221_s1 + $0x34] sm:$0xf0]  ;;  %v1899_v39 = vld [vmem:[%s3221_s1 + $0x20] sm:$0xf]  ;;  %v2546_v40 = vld [vmem:[%s3221_s1 + $0x2c] sm:$0xf0]  ;;  %v1952_v41 = vor.u32 %v2556_v29, %v1949_v30 }
  0x2d   : > { %504 = vmatpush.bf16.msra.mxu3 %v1928_v18  ;;  %v1965_v18 = vld [vmem:[%s3221_s1 + $0xb0] sm:$0xf0]  ;;  %v1908_v45 = vor.u32 %v2547_v37, %v1907_v36  ;;  %v1891_v46 = vld [vmem:[%s3221_s1 + $0x8] sm:$0xf]  ;;  %v2543_v47 = vld [vmem:[%s3221_s1 + $0x14] sm:$0xf0]  ;;  %v1900_v48 = vor.u32 %v2546_v40, %v1899_v39 }
  0x2e   : > { %v1933_v44 = vld [vmem:[%s3221_s1 + $0x70] sm:$0xf0]  ;;  %v2131_v49 = vld [vmem:[#allocation4 + $0xe8] sm:$0xf]  ;;  %v2603_v50 = vld [vmem:[#allocation4 + $0xf4] sm:$0xf0]  ;;  %v1892_v54 = vor.u32 %v2543_v47, %v1891_v46 }
  0x2f   : > { %v1883_v52 = vld [vmem:[%s3221_s1] sm:$0xf]  ;;  %v2542_v53 = vld [vmem:[%s3221_s1 + $0xc] sm:$0xf0]  ;;  %v2132_v57 = vor.u32 %v2603_v50, %v2131_v49  ;;  %v2115_v59 = vld [vmem:[#allocation4 + $0xc8] sm:$0xf] }
  0x30   : > { %446 = vmatpush.bf16.msra.mxu0 %v1932_v24  ;;  %v2602_v56 = vld [vmem:[#allocation4 + $0xec] sm:$0xf0]  ;;  %v1884_v58 = vor.u32 %v2542_v53, %v1883_v52  ;;  %v2599_v60 = vld [vmem:[#allocation4 + $0xd4] sm:$0xf0]  ;;  %v2107_v62 = vld [vmem:[#allocation4 + $0xc0] sm:$0xf] }
  0x31   : > { %505 = vmatpush.bf16.msra.mxu3 %v1912_v21  ;;  %v1940_v21 = vor.u32 %v2555_v11, %v1939_v10  ;;  %v2598_v63 = vld [vmem:[#allocation4 + $0xcc] sm:$0xf0]  ;;  %v2116_v0 = vor.u32 %v2599_v60, %v2115_v59  ;;  %v2099_v1 = vld [vmem:[#allocation4 + $0xa8] sm:$0xf]  ;;  %v2591_v6 = vld [vmem:[#allocation4 + $0x94] sm:$0xf0] }
  0x32   : > { %v2108_v3 = vor.u32 %v2598_v63, %v2107_v62  ;;  %v2083_v5 = vld [vmem:[#allocation4 + $0x88] sm:$0xf]  ;;  %v2091_v8 = vld [vmem:[#allocation4 + $0xa0] sm:$0xf]  ;;  %v2594_v10 = vld [vmem:[#allocation4 + $0xac] sm:$0xf0] }
  0x33   : > { %484 = vmatpush.bf16.msra.mxu2 %v1940_v21  ;;  %v2084_v7 = vor.u32 %v2591_v6, %v2083_v5  ;;  %v2092_v11 = vor.u32 %v2594_v10, %v2091_v8  ;;  %v2548_v12 = vld [vmem:[%s3221_s1 + $0x44] sm:$0xf]  ;;  %v1917_v13 = vld [vmem:[%s3221_s1 + $0x50] sm:$0xf0]  ;;  %v2067_v14 = vld [vmem:[#allocation4 + $0x68] sm:$0xf] }
  0x34   : > { %v1920_v15 = vor.u32 %v2548_v12, %v1917_v13  ;;  %v2544_v21 = vld [vmem:[%s3221_s1 + $0x24] sm:$0xf]  ;;  %v1901_v22 = vld [vmem:[%s3221_s1 + $0x30] sm:$0xf0]  ;;  %v2051_v24 = vld [vmem:[#allocation4 + $0x48] sm:$0xf] }
  0x35   : > { %506 = vmatpush.bf16.msra.mxu3 %v1896_v26  ;;  %v2550_v26 = vld [vmem:[%s3221_s1 + $0x4c] sm:$0xf0]  ;;  %v1904_v23 = vor.u32 %v2544_v21, %v1901_v22  ;;  %v2540_v30 = vld [vmem:[%s3221_s1 + $0x4] sm:$0xf]  ;;  %v2579_v36 = vld [vmem:[#allocation4 + $0x34] sm:$0xf0] }
  0x36   : > { %v1916_v38 = vor.u32 %v2550_v26, %v1915_v25  ;;  %v2583_v25 = vld [vmem:[#allocation4 + $0x54] sm:$0xf0]  ;;  %v2600_v37 = vld [vmem:[#allocation4 + $0xe4] sm:$0xf]  ;;  %v2027_v50 = vld [vmem:[#allocation4 + $0x20] sm:$0xf] }
  0x37   : > { %485 = vmatpush.bf16.msra.mxu2 %v1924_v35  ;;  %v2052_v26 = vor.u32 %v2583_v25, %v2051_v24  ;;  %v2596_v47 = vld [vmem:[#allocation4 + $0xc4] sm:$0xf]  ;;  %v2077_v59 = vld [vmem:[#allocation4 + $0x90] sm:$0xf0]  ;;  %v3129_v6 = vld [vmem:[%s3223_s3] sm:$0xf] }
  0x38   : > { %507 = vmatmul.bf16.vlgmr.msra.gmra.mxu3 %v2962_v32  ;;  %447 = vmatpush.bf16.msra.mxu0 %v1916_v38  ;;  %v2125_v38 = vld [vmem:[#allocation4 + $0xf0] sm:$0xf0]  ;;  %v2592_v53 = vld [vmem:[#allocation4 + $0xa4] sm:$0xf]  ;;  %v3132_v8 = vperm.slane %v3129_v6, 3 }
  0x39   : > { %753 = vmatpush.bf16.msrb.mxu3 %v2136_v27  ;;  %v1968_v27 = vor.u32 %v2560_v17, %v1965_v18  ;;  %v2075_v17 = vld [vmem:[#allocation4 + $0x80] sm:$0xf]  ;;  %v2590_v18 = vld [vmem:[#allocation4 + $0x8c] sm:$0xf0]  ;;  %v2128_v40 = vor.u32 %v2600_v37, %v2125_v38  ;;  %v2061_v62 = vld [vmem:[#allocation4 + $0x70] sm:$0xf0] }
  0x3a   : > { %v2076_v20 = vor.u32 %v2590_v18, %v2075_v17  ;;  %v2029_v5 = vld [vmem:[#allocation4 + $0x30] sm:$0xf0]  ;;  %v2572_v10 = vld [vmem:[#allocation4 + $0x4] sm:$0xf]  ;;  %v2255_v13 = vld [vmem:[#allocation4 + $0xe0] sm:$0xf] }
  0x3b   : > { %463 = vmatpush.bf16.msra.mxu1 %v1968_v27  ;;  %486 = vmatpush.bf16.msra.mxu2 %v1908_v45  ;;  %v2059_v27 = vld [vmem:[#allocation4 + $0x60] sm:$0xf]  ;;  %v2575_v45 = vld [vmem:[#allocation4 + $0x14] sm:$0xf0]  ;;  %v2257_v18 = vld [vmem:[#allocation4 + $0xf0] sm:$0xf0] }
  0x3c   : > { %448 = vmatpush.bf16.msra.mxu0 %v1900_v48  ;;  %v2109_v48 = vld [vmem:[#allocation4 + $0xd0] sm:$0xf0]  ;;  %v2265_v24 = vld [vmem:[#allocation4 + $0xf8] sm:$0xf0]  ;;  %v2629_v37 = vld [vmem:[#allocation4 + $0xcc] sm:$0xf] }
  0x3d   : > { %754 = vmatpush.bf16.msrb.mxu3 %v2120_v33  ;;  %v2573_v33 = vld [vmem:[#allocation4 + $0xc] sm:$0xf]  ;;  %v2112_v49 = vor.u32 %v2596_v47, %v2109_v48  ;;  %v2249_v38 = vld [vmem:[#allocation4 + $0xd8] sm:$0xf0]  ;;  %v2231_v47 = vld [vmem:[#allocation4 + $0xa8] sm:$0xf] }
  0x3e   : > { %v2024_v42 = vor.u32 %v2573_v33, %v2021_v34  ;;  %v1885_v33 = vld [vmem:[%s3221_s1 + $0x10] sm:$0xf0]  ;;  %v2035_v34 = vld [vmem:[#allocation4 + $0x28] sm:$0xf]  ;;  %v2627_v48 = vld [vmem:[#allocation4 + $0xb4] sm:$0xf0] }
  0x3f   : > { %464 = vmatpush.bf16.msra.mxu1 %v1952_v41  ;;  %487 = vmatpush.bf16.msra.mxu2 %v1892_v54  ;;  %v1888_v35 = vor.u32 %v2540_v30, %v1885_v33  ;;  %v2036_v39 = vor.u32 %v2579_v36, %v2035_v34  ;;  %v2043_v41 = vld [vmem:[#allocation4 + $0x40] sm:$0xf]  ;;  %v2093_v54 = vld [vmem:[#allocation4 + $0xb0] sm:$0xf0]  ;;  %v2247_v33 = vld [vmem:[#allocation4 + $0xc8] sm:$0xf] }
  0x40   : > { %449 = vmatpush.bf16.msra.mxu0 %v1884_v58  ;;  %v2241_v30 = vld [vmem:[#allocation4 + $0xd0] sm:$0xf0]  ;;  %v2631_v34 = vld [vmem:[#allocation4 + $0xd4] sm:$0xf0] }
  0x41   : > { %755 = vmatpush.bf16.msrb.mxu3 %v2104_v43  ;;  %v2552_v43 = vld [vmem:[%s3221_s1 + $0x64] sm:$0xf]  ;;  %v2248_v36 = vor.u32 %v2631_v34, %v2247_v33  ;;  %v2159_v34 = vld [vmem:[#allocation4 + $0x20] sm:$0xf] }
  0x42   : > { %v1936_v51 = vor.u32 %v2552_v43, %v1933_v44  ;;  %488 = vmatmul.bf16.vlgmr.msra.gmra.mxu2 %v2962_v32  ;;  %v2019_v44 = vld [vmem:[#allocation4 + $0x8] sm:$0xf] }
  0x43   : > { %740 = vmatpush.bf16.msrb.mxu2 %v2132_v57  ;;  %450 = vmatmul.bf16.vlgmr.msra.gmra.mxu0 %v2962_v32  ;;  %v2020_v46 = vor.u32 %v2575_v45, %v2019_v44  ;;  %v2574_v57 = vld [vmem:[#allocation4 + $0xc] sm:$0xf0] }
  0x44   : > { %465 = vmatpush.bf16.msra.mxu1 %v1936_v51  ;;  %v2578_v51 = vld [vmem:[#allocation4 + $0x2c] sm:$0xf0] }
  0x45   : > { %756 = vmatpush.bf16.msrb.mxu3 %v2088_v55  ;;  %v2123_v55 = vld [vmem:[#allocation4 + $0xe0] sm:$0xf]  ;;  %v2028_v52 = vor.u32 %v2578_v51, %v2027_v50  ;;  %v2232_v50 = vor.u32 %v2627_v48, %v2231_v47  ;;  %v2625_v51 = vld [vmem:[#allocation4 + $0xac] sm:$0xf]  ;;  %v2604_v48 = vld [vmem:[#allocation4 + $0x4] sm:$0xf] }
  0x46   : > { %v2124_v61 = vor.u32 %v2602_v56, %v2123_v55  ;;  %v2011_v55 = vld [vmem:[#allocation4] sm:$0xf]  ;;  %v2096_v56 = vor.u32 %v2592_v53, %v2093_v54  ;;  %v2622_v54 = vld [vmem:[#allocation4 + $0x8c] sm:$0xf0] }
  0x47   : > { %741 = vmatpush.bf16.msrb.mxu2 %v2116_v0  ;;  %v2012_v58 = vor.u32 %v2574_v57, %v2011_v55  ;;  %v2580_v0 = vld [vmem:[#allocation4 + $0x44] sm:$0xf]  ;;  %v2207_v53 = vld [vmem:[#allocation4 + $0x80] sm:$0xf]  ;;  %v2209_v57 = vld [vmem:[#allocation4 + $0x90] sm:$0xf0] }
  0x48   : > { %512 = vmatmul.bf16.gmra.mxu3 %v3028_v9  ;;  %714 = vmatpush.bf16.msrb.mxu0 %v2124_v61  ;;  %v2584_v61 = vld [vmem:[#allocation4 + $0x64] sm:$0xf]  ;;  %v2143_v47 = vld [vmem:[#allocation4] sm:$0xf] }
  0x49   : > { %757 = vmatpush.bf16.msrb.mxu3 %v2072_v2  ;;  %v2595_v2 = vld [vmem:[#allocation4 + $0xb4] sm:$0xf0]  ;;  %466 = vmatpush.bf16.msra.mxu1 %v1920_v15  ;;  %v2064_v63 = vor.u32 %v2584_v61, %v2061_v62  ;;  %v2632_v15 = vld [vmem:[#allocation4 + $0xe4] sm:$0xf]  ;;  %v2621_v61 = vld [vmem:[#allocation4 + $0x8c] sm:$0xf] }
  0x4a   : > { %v2100_v4 = vor.u32 %v2595_v2, %v2099_v1  ;;  %v2045_v1 = vld [vmem:[#allocation4 + $0x50] sm:$0xf0]  ;;  %v2260_v21 = vor.u32 %v2632_v15, %v2257_v18  ;;  %v2620_v55 = vld [vmem:[#allocation4 + $0x84] sm:$0xf]  ;;  %v2217_v62 = vld [vmem:[#allocation4 + $0x98] sm:$0xf0] }
  0x4b   : > { %v2201_v15 = vld [vmem:[#allocation4 + $0x78] sm:$0xf0]  ;;  %v2175_v18 = vld [vmem:[#allocation4 + $0x40] sm:$0xf] }
  0x4c   : > { %715 = vmatpush.bf16.msrb.mxu0 %v2108_v3  ;;  %742 = vmatpush.bf16.msrb.mxu2 %v2100_v4  ;;  %v2048_v3 = vor.u32 %v2580_v0, %v2045_v1  ;;  %v2576_v4 = vld [vmem:[#allocation4 + $0x24] sm:$0xf]  ;;  %v2191_v1 = vld [vmem:[#allocation4 + $0x60] sm:$0xf] }
  0x4d   : > { %758 = vmatpush.bf16.msrb.mxu3 %v2056_v16  ;;  %v2587_v16 = vld [vmem:[#allocation4 + $0x74] sm:$0xf0]  ;;  %467 = vmatpush.bf16.msra.mxu1 %v1904_v23  ;;  %v2633_v23 = vld [vmem:[#allocation4 + $0xec] sm:$0xf] }
  0x4e   : > { %v2068_v19 = vor.u32 %v2587_v16, %v2067_v14  ;;  %v2634_v14 = vld [vmem:[#allocation4 + $0xec] sm:$0xf0]  ;;  %v2268_v25 = vor.u32 %v2633_v23, %v2265_v24  ;;  %v2183_v23 = vld [vmem:[#allocation4 + $0x48] sm:$0xf]  ;;  %v2615_v24 = vld [vmem:[#allocation4 + $0x54] sm:$0xf0] }
  0x4f   : > { %v2256_v17 = vor.u32 %v2634_v14, %v2255_v13  ;;  %v2617_v14 = vld [vmem:[#allocation4 + $0x6c] sm:$0xf] }
  0x50   : > { %743 = vmatpush.bf16.msrb.mxu2 %v2084_v7  ;;  %716 = vmatpush.bf16.msrb.mxu0 %v2092_v11  ;;  %v2032_v7 = vor.u32 %v2576_v4, %v2029_v5  ;;  %v2616_v4 = vld [vmem:[#allocation4 + $0x64] sm:$0xf] }
  0x51   : > { %759 = vmatpush.bf16.msrb.mxu3 %v2040_v28  ;;  %v2586_v28 = vld [vmem:[#allocation4 + $0x6c] sm:$0xf0]  ;;  %468 = vmatpush.bf16.msra.mxu1 %v1888_v35 }
  0x52   : > { %493 = vmatmul.bf16.gmra.mxu2 %v3028_v9  ;;  %v2060_v29 = vor.u32 %v2586_v28, %v2059_v27  ;;  %v2630_v27 = vld [vmem:[#allocation4 + $0xcc] sm:$0xf0]  ;;  %v2628_v28 = vld [vmem:[#allocation4 + $0xc4] sm:$0xf] }
  0x53   : > { %455 = vmatmul.bf16.gmra.mxu0 %v3028_v9  ;;  %v2244_v35 = vor.u32 %v2628_v28, %v2241_v30  ;;  %v2185_v28 = vld [vmem:[#allocation4 + $0x58] sm:$0xf0] }
  0x54   : > { %744 = vmatpush.bf16.msrb.mxu2 %v2068_v19  ;;  %717 = vmatpush.bf16.msrb.mxu0 %v2076_v20  ;;  %v2263_v19 = vld [vmem:[#allocation4 + $0xe8] sm:$0xf]  ;;  %v2635_v20 = vld [vmem:[#allocation4 + $0xf4] sm:$0xf0] }
  0x55   : > { %760 = vmatpush.bf16.msrb.mxu3 %v2024_v42  ;;  %v2582_v42 = vld [vmem:[#allocation4 + $0x4c] sm:$0xf0]  ;;  %727 = vmatpush.bf16.msrb.mxu1 %v2128_v40  ;;  %v2264_v22 = vor.u32 %v2635_v20, %v2263_v19  ;;  %v2612_v20 = vld [vmem:[#allocation4 + $0x44] sm:$0xf] }
  0x56   : > { %v2044_v43 = vor.u32 %v2582_v42, %v2043_v41  ;;  %469 = vmatmul.bf16.vlgmr.msra.gmra.mxu1 %v2962_v32  ;;  %v2588_v32 = vld [vmem:[#allocation4 + $0x84] sm:$0xf]  ;;  %v2223_v41 = vld [vmem:[#allocation4 + $0xa0] sm:$0xf]  ;;  %v2626_v42 = vld [vmem:[#allocation4 + $0xac] sm:$0xf0] }
  0x57   : > { %v2080_v60 = vor.u32 %v2588_v32, %v2077_v59  ;;  %v2224_v45 = vor.u32 %v2626_v42, %v2223_v41  ;;  %v2623_v32 = vld [vmem:[#allocation4 + $0x94] sm:$0xf0]  ;;  %v2212_v59 = vor.u32 %v2620_v55, %v2209_v57  ;;  %v2614_v19 = vld [vmem:[#allocation4 + $0x4c] sm:$0xf0]  ;;  %v2153_v55 = vld [vmem:[#allocation4 + $0x18] sm:$0xf0] }
  0x58   : > { %761 = vmatmul.bf16.vlgmr.msrb.gmra.mxu3 %v2959_v31  ;;  %745 = vmatpush.bf16.msrb.mxu2 %v2052_v26  ;;  %v2239_v26 = vld [vmem:[#allocation4 + $0xc0] sm:$0xf]  ;;  %v2611_v41 = vld [vmem:[#allocation4 + $0x34] sm:$0xf0] }
  0x59   : > { %718 = vmatpush.bf16.msrb.mxu0 %v2060_v29  ;;  %728 = vmatpush.bf16.msrb.mxu1 %v2112_v49  ;;  %v2240_v29 = vor.u32 %v2630_v27, %v2239_v26  ;;  %v2184_v26 = vor.u32 %v2615_v24, %v2183_v23  ;;  %v2613_v27 = vld [vmem:[#allocation4 + $0x4c] sm:$0xf] }
  0x5a   : > { %1071 = vmatpush.bf16.msra.mxu3 %v2268_v25  ;;  %v2188_v30 = vor.u32 %v2613_v27, %v2185_v28 }
  0x5c   : > { %746 = vmatpush.bf16.msrb.mxu2 %v2036_v39  ;;  %v2252_v39 = vor.u32 %v2629_v37, %v2249_v38 }
  0x5d   : > { %719 = vmatpush.bf16.msrb.mxu0 %v2044_v43  ;;  %729 = vmatpush.bf16.msrb.mxu1 %v2096_v56  ;;  %v2624_v43 = vld [vmem:[#allocation4 + $0xa4] sm:$0xf]  ;;  %v2208_v56 = vor.u32 %v2622_v54, %v2207_v53  ;;  %v2605_v53 = vld [vmem:[#allocation4 + $0xc] sm:$0xf] }
  0x5e   : > { %1072 = vmatpush.bf16.msra.mxu3 %v2252_v39  ;;  %v2161_v39 = vld [vmem:[#allocation4 + $0x30] sm:$0xf0] }
  0x60   : > { %747 = vmatpush.bf16.msrb.mxu2 %v2020_v46  ;;  %v2225_v46 = vld [vmem:[#allocation4 + $0xb0] sm:$0xf0] }
  0x61   : > { %720 = vmatpush.bf16.msrb.mxu0 %v2028_v52  ;;  %730 = vmatpush.bf16.msrb.mxu1 %v2080_v60  ;;  %v2228_v49 = vor.u32 %v2624_v43, %v2225_v46  ;;  %v2169_v46 = vld [vmem:[#allocation4 + $0x38] sm:$0xf0] }
  0x63   : > { %748 = vmatmul.bf16.vlgmr.msrb.gmra.mxu2 %v2959_v31 }
  0x64   : > { %1058 = vmatpush.bf16.msra.mxu2 %v2264_v22  ;;  %v2177_v22 = vld [vmem:[#allocation4 + $0x50] sm:$0xf0] }
  0x65   : > { %721 = vmatpush.bf16.msrb.mxu0 %v2012_v58  ;;  %731 = vmatpush.bf16.msrb.mxu1 %v2064_v63  ;;  %v2215_v58 = vld [vmem:[#allocation4 + $0x88] sm:$0xf]  ;;  %v2220_v63 = vor.u32 %v2621_v61, %v2217_v62  ;;  %v2180_v25 = vor.u32 %v2612_v20, %v2177_v22  ;;  %v262_v62 = vperm.slane %v3129_v6, 0 }
  0x66   : > { %474 = vmatmul.bf16.gmra.mxu1 %v3028_v9  ;;  %v2013_v9 = vld [vmem:[#allocation4 + $0x10] sm:$0xf0]  ;;  %v2216_v60 = vor.u32 %v2623_v32, %v2215_v58 }
  0x67   : > { %v2016_v12 = vor.u32 %v2572_v10, %v2013_v9  ;;  %v2193_v10 = vld [vmem:[#allocation4 + $0x70] sm:$0xf0]  ;;  %v2199_v9 = vld [vmem:[#allocation4 + $0x68] sm:$0xf] }
  0x68   : > { %722 = vmatmul.bf16.vlgmr.msrb.gmra.mxu0 %v2959_v31  ;;  %1059 = vmatpush.bf16.msra.mxu2 %v2248_v36  ;;  %v2608_v36 = vld [vmem:[#allocation4 + $0x24] sm:$0xf] }
  0x69   : > { %732 = vmatpush.bf16.msrb.mxu1 %v2048_v3  ;;  %1032 = vmatpush.bf16.msra.mxu0 %v2256_v17  ;;  %v2618_v3 = vld [vmem:[#allocation4 + $0x6c] sm:$0xf0]  ;;  %v2204_v17 = vor.u32 %v2617_v14, %v2201_v15  ;;  %v2164_v42 = vor.u32 %v2608_v36, %v2161_v39 }
  0x6c   : > { %1060 = vmatpush.bf16.msra.mxu2 %v2232_v50 }
  0x6d   : > { %733 = vmatpush.bf16.msrb.mxu1 %v2032_v7  ;;  %1033 = vmatpush.bf16.msra.mxu0 %v2240_v29  ;;  %v2192_v7 = vor.u32 %v2618_v3, %v2191_v1 }
  0x70   : > { %1061 = vmatpush.bf16.msra.mxu2 %v2216_v60 }
  0x71   : > { %734 = vmatpush.bf16.msrb.mxu1 %v2016_v12  ;;  %1034 = vmatpush.bf16.msra.mxu0 %v2224_v45  ;;  %v2196_v12 = vor.u32 %v2616_v4, %v2193_v10  ;;  %v2609_v45 = vld [vmem:[#allocation4 + $0x2c] sm:$0xf]  ;;  %v3152_v10 = vld [vmem:[#allocation3] sm:$0xff] }
  0x75   : > { %1045 = vmatpush.bf16.msra.mxu1 %v2260_v21  ;;  %1035 = vmatpush.bf16.msra.mxu0 %v2208_v56  ;;  %v2176_v21 = vor.u32 %v2614_v19, %v2175_v18  ;;  %v2156_v56 = vor.u32 %v2605_v53, %v2153_v55 }
  0x76   : > { %735 = vmatmul.bf16.vlgmr.msrb.gmra.mxu1 %v2959_v31  ;;  %v2233_v31 = vld [vmem:[#allocation4 + $0xb8] sm:$0xf0] }
  0x77   : > { %v2236_v52 = vor.u32 %v2625_v51, %v2233_v31  ;;  %v2151_v31 = vld [vmem:[#allocation4 + $0x8] sm:$0xf] }
  0x79   : > { %1046 = vmatpush.bf16.msra.mxu1 %v2244_v35  ;;  %1073 = vmatpush.bf16.msra.mxu3 %v2236_v52  ;;  %v2610_v35 = vld [vmem:[#allocation4 + $0x2c] sm:$0xf0]  ;;  %v2607_v52 = vld [vmem:[#allocation4 + $0x14] sm:$0xf0] }
  0x7a   : > { %1036 = vmatpush.bf16.msra.mxu0 %v2192_v7  ;;  %v2160_v38 = vor.u32 %v2610_v35, %v2159_v34  ;;  %v2152_v54 = vor.u32 %v2607_v52, %v2151_v31  ;;  %v263_v35 = vperm.slane %v3129_v6, 1 }
  0x7d   : > { %1047 = vmatpush.bf16.msra.mxu1 %v2228_v49  ;;  %1074 = vmatpush.bf16.msra.mxu3 %v2220_v63  ;;  %v2145_v49 = vld [vmem:[#allocation4 + $0x10] sm:$0xf0]  ;;  %v264_v63 = vperm.slane %v3129_v6, 2 }
  0x7e   : > { %1037 = vmatpush.bf16.msra.mxu0 %v2176_v21  ;;  %v2148_v51 = vor.u32 %v2604_v48, %v2145_v49 }
  0x81   : > { %1048 = vmatpush.bf16.msra.mxu1 %v2212_v59  ;;  %1075 = vmatpush.bf16.msra.mxu3 %v2204_v17 }
  0x82   : > { %1038 = vmatpush.bf16.msra.mxu0 %v2160_v38 }
  0x85   : > { %1049 = vmatpush.bf16.msra.mxu1 %v2196_v12  ;;  %1076 = vmatpush.bf16.msra.mxu3 %v2188_v30 }
  0x89   : > { %1050 = vmatpush.bf16.msra.mxu1 %v2180_v25 }
  0x8d   : > { %1051 = vmatpush.bf16.msra.mxu1 %v2164_v42 }
  0x91   : > { %1052 = vmatpush.bf16.msra.mxu1 %v2148_v51 }
  0xbb   : > { %v3124_v2 = vpop.f32.mrf.mxu3 }
  0xbc   : > { %v509_v29 = vadd.f32 %v3124_v2, %v3132_v8  ;;  %v2172_v2 = vor.u32 %v2609_v45, %v2169_v46 }
  0xbe   : > { %1077 = vmatpush.bf16.msra.mxu3 %v2172_v2 }
  0xc0   : > { %v451_v59 = vpop.f32.mrf.mxu0 }
  0xc1   : > { %v452_v36 = vadd.f32 %v451_v59, %v262_v62 }
  0xc2   : > { %1078 = vmatpush.bf16.msra.mxu3 %v2156_v56 }
  0xc3   : > { %v510_v11 = vpop.f32.mrf.mxu3 }
  0xc4   : > { %v3135_v16 = vadd.f32 %v510_v11, %v3132_v8  ;;  %v2619_v11 = vld [vmem:[#allocation4 + $0x74] sm:$0xf0] }
  0xc5   : > { %v2200_v13 = vor.u32 %v2619_v11, %v2199_v9  ;;  %v489_v60 = vpop.f32.mrf.mxu2 }
  0xc7   : > { %1062 = vmatpush.bf16.msra.mxu2 %v2200_v13 }
  0xc8   : > { %v453_v1 = vpop.f32.mrf.mxu0 }
  0xc9   : > { %v3148_v4 = vadd.f32 %v453_v1, %v262_v62 }
  0xcb   : > { %v513_v40 = vpop.f32.mrf.mxu3  ;;  %1063 = vmatpush.bf16.msra.mxu2 %v2184_v26 }
  0xcc   : > { %v3139_v44 = vadd.f32 %v513_v40, %v3132_v8  ;;  %v2167_v40 = vld [vmem:[#allocation4 + $0x28] sm:$0xf] }
  0xcd   : > { %v2168_v43 = vor.u32 %v2611_v41, %v2167_v40  ;;  %v491_v3 = vpop.f32.mrf.mxu2 }
  0xce   : > { %v3150_v7 = vadd.f32 %v491_v3, %v264_v63 }
  0xcf   : > { %1064 = vmatpush.bf16.msra.mxu2 %v2168_v43 }
  0xd0   : > { %v456_v11 = vpop.f32.mrf.mxu0 }
  0xd1   : > { %v3154_v14 = vadd.f32 %v456_v11, %v262_v62 }
  0xd3   : > { %v515_v0 = vpop.f32.mrf.mxu3  ;;  %1065 = vmatpush.bf16.msra.mxu2 %v2152_v54  ;;  %v470_v34 = vpop.f32.mrf.mxu1 }
  0xd4   : > { %v3142_v5 = vadd.f32 %v515_v0, %v3132_v8  ;;  %v2606_v8 = vld [vmem:[#allocation4 + $0xc] sm:$0xf0]  ;;  %v471_v52 = vadd.f32 %v470_v34, %v263_v35 }
  0xd5   : > { %v2144_v50 = vor.u32 %v2606_v8, %v2143_v47  ;;  %v494_v12 = vpop.f32.mrf.mxu2  ;;  %v2666_v34 = vld [vmem:[#allocation4 + $0xec] sm:$0xf0] }
  0xd6   : > { %v3156_v15 = vadd.f32 %v494_v12, %v264_v63 }
  0xd7   : > { %1039 = vmatpush.bf16.msra.mxu0 %v2144_v50 }
  0xd8   : > { %v458_v28 = vpop.f32.mrf.mxu0 }
  0xd9   : > { %v3160_v30 = vadd.f32 %v458_v28, %v262_v62 }
  0xdb   : > { %v762_v33 = vpop.f32.mrf.mxu3  ;;  %v472_v38 = vpop.f32.mrf.mxu1 }
  0xdc   : > { %v769_v37 = vadd.f32 %v762_v33, %v509_v29  ;;  %v3165_v39 = vadd.f32 %v472_v38, %v263_v35  ;;  %v2395_v38 = vld [vmem:[#allocation4 + $0xe8] sm:$0xf] }
  0xdd   : > { %v496_v29 = vpop.f32.mrf.mxu2 }
  0xde   : > { %2722 = vtanh.f32 %v769_v37  ;;  %v3162_v33 = vadd.f32 %v496_v29, %v264_v63  ;;  %v490_v37 = vadd.f32 %v489_v60, %v264_v63  ;;  %v2387_v29 = vld [vmem:[#allocation4 + $0xe0] sm:$0xf] }
  0xe3   : > { %v764_v57 = vpop.f32.mrf.mxu3  ;;  %v475_v45 = vpop.f32.mrf.mxu1 }
  0xe4   : > { %v2723_v58 = vpop.eup %2722  ;;  %v3167_v46 = vadd.f32 %v475_v45, %v263_v35  ;;  %v2397_v45 = vld [vmem:[#allocation4 + $0xf8] sm:$0xf0] }
  0xe5   : > { %v2139_v32 = vmul.f32 -1.442695, %v2723_v58  ;;  %v723_v40 = vpop.f32.mrf.mxu0 }
  0xe6   : > { %v749_v41 = vpop.f32.mrf.mxu2  ;;  %v766_v42 = vadd.f32 %v723_v40, %v452_v36  ;;  %v2388_v36 = vor.u32 %v2666_v34, %v2387_v29  ;;  %v2667_v40 = vld [vmem:[#allocation4 + $0xf4] sm:$0xf0]  ;;  %v2323_v34 = vld [vmem:[#allocation4 + $0x60] sm:$0xf] }
  0xe7   : > { %2724 = vpow2.f32 %v2139_v32  ;;  %v768_v43 = vadd.f32 %v749_v41, %v490_v37  ;;  %v2389_v37 = vld [vmem:[#allocation4 + $0xf0] sm:$0xf0] }
  0xe8   : > { %1350 = vmatpush.bf16.msrb.mxu0 %v2388_v36  ;;  %v2648_v36 = vld [vmem:[#allocation4 + $0x64] sm:$0xf] }
  0xeb   : > { %v477_v50 = vpop.f32.mrf.mxu1 }
  0xec   : > { %v3169_v51 = vadd.f32 %v477_v50, %v263_v35  ;;  %v2664_v35 = vld [vmem:[#allocation4 + $0xe4] sm:$0xf]  ;;  %v2663_v50 = vld [vmem:[#allocation4 + $0xd4] sm:$0xf0] }
  0xed   : > { %v2725_v61 = vpop.eup %2724  ;;  %v725_v47 = vpop.f32.mrf.mxu0  ;;  %v2392_v41 = vor.u32 %v2664_v35, %v2389_v37  ;;  %v2650_v35 = vld [vmem:[#allocation4 + $0x6c] sm:$0xf0] }
  0xee   : > { %v816_v0 = vadd.f32 1.0, %v2725_v61  ;;  %v751_v2 = vpop.f32.mrf.mxu2  ;;  %v2324_v37 = vor.u32 %v2650_v35, %v2323_v34  ;;  %v2637_v34 = vld [vmem:[#allocation4 + $0xc] sm:$0xf] }
  0xef   : > { %1363 = vmatpush.bf16.msrb.mxu1 %v2392_v41  ;;  %v2371_v2 = vld [vmem:[#allocation4 + $0xc0] sm:$0xf] }
  0xf0   : > { %2726 = vrcp.f32 %v816_v0  ;;  %v828_v18 = vand.u32 2147483648, %v816_v0  ;;  %v826_v20 = vand.u32 2147483647, %v816_v0  ;;  %vm822_vm1 = vweird.f32 %v816_v0 }
  0xf1   : > { %2728 = vtanh.f32 %v3152_v10 }
  0xf2   : > { %v829_v23 = vor.u32 1.1754944e-38, %v828_v18  ;;  %vm827_vm3 = vcmp.eq.f32.partialorder %v826_v20, 8.507059e+37  ;;  %2730 = vtanh.f32 %v766_v42  ;;  %v2396_v42 = vor.u32 %v2667_v40, %v2395_v38  ;;  %v2325_v38 = vld [vmem:[#allocation4 + $0x70] sm:$0xf0]  ;;  %v2331_v40 = vld [vmem:[#allocation4 + $0x68] sm:$0xf] }
  0xf3   : > { %2732 = vtanh.f32 %v768_v43  ;;  %v736_v56 = vpop.f32.mrf.mxu1  ;;  %v2665_v43 = vld [vmem:[#allocation4 + $0xec] sm:$0xf]  ;;  %v2328_v41 = vor.u32 %v2648_v36, %v2325_v38 }
  0xf4   : > { %v767_v57 = vadd.f32 %v736_v56, %v471_v52  ;;  %v2400_v47 = vor.u32 %v2665_v43, %v2397_v45  ;;  %1376 = vmatpush.bf16.msrb.mxu2 %v2396_v42  ;;  %v2355_v56 = vld [vmem:[#allocation4 + $0xa0] sm:$0xf]  ;;  %v2649_v42 = vld [vmem:[#allocation4 + $0x6c] sm:$0xf]  ;;  %v2333_v43 = vld [vmem:[#allocation4 + $0x78] sm:$0xf0] }
  0xf5   : > { %v2336_v45 = vor.u32 %v2649_v42, %v2333_v43 }
  0xf6   : > { %v2727_v9 = vpop.eup %2726  ;;  %1389 = vmatpush.bf16.msrb.mxu3 %v2400_v47 }
  0xf7   : > { %v818_v13 = vmul.f32 %v2727_v9, %v816_v0  ;;  %vm823_vm0 = vweird.f32 %v2727_v9  ;;  %v2729_v22 = vpop.eup %2728 }
  0xf8   : > { %vm824_vm2 = vmor %vm822_vm1, %vm823_vm0  ;;  %v2731_v8 = vpop.eup %2730 }
  0xf9   : > { %v819_v17 = vsub.f32 1.0, %v818_v13  ;;  %v2733_v48 = vpop.eup %2732  ;;  %v2137_v49 = vmul.f32 -1.442695, %v2731_v8  ;;  %v2660_v8 = vld [vmem:[#allocation4 + $0xc4] sm:$0xf] }
  0xfa   : > { %v2138_v6 = vmul.f32 -1.442695, %v2733_v48 }
  0xfb   : > { %v820_v19 = vmul.f32 %v2727_v9, %v819_v17  ;;  %2734 = vpow2.f32 %v2137_v49  ;;  %v738_v63 = vpop.f32.mrf.mxu1  ;;  %v2373_v49 = vld [vmem:[#allocation4 + $0xd0] sm:$0xf0] }
  0xfc   : > { %2736 = vpow2.f32 %v2138_v6  ;;  %v2379_v6 = vld [vmem:[#allocation4 + $0xc8] sm:$0xf] }
  0xfd   : > { %v821_v21 = vadd.f32 %v2727_v9, %v820_v19  ;;  %v2380_v52 = vor.u32 %v2663_v50, %v2379_v6 }
  0xff   : > { %v825_v24 = vsel %vm824_vm2, %v2727_v9, %v821_v21  ;;  %1377 = vmatpush.bf16.msrb.mxu2 %v2380_v52  ;;  %v2309_v52 = vld [vmem:[#allocation4 + $0x50] sm:$0xf0] }
 0x100   : > { %v830_v25 = vsel %vm827_vm3, %v829_v23, %v825_v24 }
 0x101   : > { %v836_v26 = vmul.f32 %v2729_v22, %v830_v25  ;;  %v2735_v31 = vpop.eup %2734 }
 0x102   : > { %v2737_v53 = vpop.eup %2736  ;;  %v777_v54 = vadd.f32 1.0, %v2735_v31  ;;  %v2376_v31 = vor.u32 %v2660_v8, %v2373_v49  ;;  %v2646_v8 = vld [vmem:[#allocation4 + $0x4c] sm:$0xf0] }
 0x103   : > { %v837_v27 = vpack.c.bf16 %v836_v26, %v836_v26  ;;  %v797_v55 = vadd.f32 1.0, %v2737_v53  ;;  %v2661_v53 = vld [vmem:[#allocation4 + $0xcc] sm:$0xf] }
 0x104   : > { %2738 = vrcp.f32 %v777_v54  ;;  %vm783_vm4 = vweird.f32 %v777_v54  ;;  %v789_v60 = vand.u32 2147483648, %v777_v54  ;;  %v787_v62 = vand.u32 2147483647, %v777_v54  ;;  %1364 = vmatpush.bf16.msrb.mxu1 %v2376_v31 }
 0x105   : > { %2140 = vst [vmem:[%s2908_s5 + $0x4] sm:$0xf] %v837_v27  ;;  %1040 = vmatmul.bf16.vlgmr.msra.gmra.mxu0 %v837_v27  ;;  %1053 = vmatmul.bf16.vlgmr.msra.gmra.mxu1 %v837_v27  ;;  %2740 = vrcp.f32 %v797_v55  ;;  %vm803_vm6 = vweird.f32 %v797_v55  ;;  %v809_v3 = vand.u32 2147483648, %v797_v55  ;;  %v807_v11 = vand.u32 2147483647, %v797_v55 }
 0x106   : > { %1066 = vmatmul.bf16.vlgmr.msra.gmra.mxu2 %v837_v27  ;;  %1079 = vmatmul.bf16.vlgmr.msra.gmra.mxu3 %v837_v27  ;;  %2742 = vtanh.f32 %v767_v57  ;;  %v790_v13 = vor.u32 1.1754944e-38, %v789_v60  ;;  %vm788_vm9 = vcmp.eq.f32.partialorder %v787_v62, 8.507059e+37  ;;  %v2658_v57 = vld [vmem:[#allocation4 + $0xac] sm:$0xf0]  ;;  %v2363_v60 = vld [vmem:[#allocation4 + $0xa8] sm:$0xf] }
 0x107   : > { %v810_v19 = vor.u32 1.1754944e-38, %v809_v3  ;;  %vm808_vm11 = vcmp.eq.f32.partialorder %v807_v11, 8.507059e+37  ;;  %v2654_v11 = vld [vmem:[#allocation4 + $0x8c] sm:$0xf0] }
 0x10a   : > { %v2739_v58 = vpop.eup %2738 }
 0x10b   : > { %v2741_v32 = vpop.eup %2740  ;;  %v779_v59 = vmul.f32 %v2739_v58, %v777_v54  ;;  %vm784_vm5 = vweird.f32 %v2739_v58  ;;  %v2381_v54 = vld [vmem:[#allocation4 + $0xd8] sm:$0xf0] }
 0x10c   : > { %v799_v61 = vmul.f32 %v2741_v32, %v797_v55  ;;  %v2743_v0 = vpop.eup %2742  ;;  %vm804_vm7 = vweird.f32 %v2741_v32  ;;  %vm785_vm8 = vmor %vm783_vm4, %vm784_vm5  ;;  %v2384_v55 = vor.u32 %v2661_v53, %v2381_v54  ;;  %v2315_v53 = vld [vmem:[#allocation4 + $0x48] sm:$0xf]  ;;  %v2647_v54 = vld [vmem:[#allocation4 + $0x54] sm:$0xf0] }
 0x10d   : > { %v780_v1 = vsub.f32 1.0, %v779_v59  ;;  %2744 = vtanh.f32 %v2743_v0  ;;  %vm805_vm10 = vmor %vm803_vm6, %vm804_vm7  ;;  %v2357_v59 = vld [vmem:[#allocation4 + $0xb0] sm:$0xf0]  ;;  %v2657_v0 = vld [vmem:[#allocation4 + $0xac] sm:$0xf] }
 0x10e   : > { %v800_v9 = vsub.f32 1.0, %v799_v61  ;;  %1390 = vmatpush.bf16.msrb.mxu3 %v2384_v55  ;;  %v2659_v61 = vld [vmem:[#allocation4 + $0xb4] sm:$0xf0] }
 0x10f   : > { %v781_v12 = vmul.f32 %v2739_v58, %v780_v1  ;;  %v2364_v63 = vor.u32 %v2659_v61, %v2363_v60  ;;  %v2365_v1 = vld [vmem:[#allocation4 + $0xb8] sm:$0xf0] }
 0x110   : > { %v801_v17 = vmul.f32 %v2741_v32, %v800_v9  ;;  %v2368_v3 = vor.u32 %v2657_v0, %v2365_v1  ;;  %v2339_v9 = vld [vmem:[#allocation4 + $0x80] sm:$0xf]  ;;  %v2293_v1 = vld [vmem:[#allocation4 + $0x30] sm:$0xf0] }
 0x111   : > { %v782_v18 = vadd.f32 %v2739_v58, %v781_v12  ;;  %1378 = vmatpush.bf16.msrb.mxu2 %v2364_v63  ;;  %v2652_v12 = vld [vmem:[#allocation4 + $0x84] sm:$0xf] }
 0x112   : > { %v802_v20 = vadd.f32 %v2741_v32, %v801_v17  ;;  %1391 = vmatpush.bf16.msrb.mxu3 %v2368_v3  ;;  %v2640_v63 = vld [vmem:[#allocation4 + $0x24] sm:$0xf]  ;;  %v2299_v3 = vld [vmem:[#allocation4 + $0x28] sm:$0xf] }
 0x113   : > { %v786_v21 = vsel %vm785_vm8, %v2739_v58, %v782_v18  ;;  %v2745_v22 = vpop.eup %2744  ;;  %v2656_v58 = vld [vmem:[#allocation4 + $0xa4] sm:$0xf]  ;;  %v2340_v18 = vor.u32 %v2654_v11, %v2339_v9  ;;  %v2643_v9 = vld [vmem:[#allocation4 + $0x34] sm:$0xf0] }
 0x114   : > { %v791_v23 = vsel %vm788_vm9, %v790_v13, %v786_v21  ;;  %v806_v24 = vsel %vm805_vm10, %v2741_v32, %v802_v20  ;;  %v2356_v32 = vor.u32 %v2658_v57, %v2355_v56  ;;  %v2360_v62 = vor.u32 %v2656_v58, %v2357_v59  ;;  %v2347_v20 = vld [vmem:[#allocation4 + $0x88] sm:$0xf]  ;;  %v2655_v21 = vld [vmem:[#allocation4 + $0x94] sm:$0xf0]  ;;  %v2317_v59 = vld [vmem:[#allocation4 + $0x58] sm:$0xf0] }
 0x115   : > { %v811_v25 = vsel %vm808_vm11, %v810_v19, %v806_v24  ;;  %v832_v26 = vmul.f32 %v791_v23, %v3152_v10  ;;  %v2662_v10 = vld [vmem:[#allocation4 + $0xcc] sm:$0xf0]  ;;  %v2341_v19 = vld [vmem:[#allocation4 + $0x90] sm:$0xf0]  ;;  %v2316_v58 = vor.u32 %v2647_v54, %v2315_v53  ;;  %v2300_v11 = vor.u32 %v2643_v9, %v2299_v3 }
 0x116   : > { %v833_v27 = vmul.f32 %v2745_v22, %v811_v25  ;;  %v2372_v48 = vor.u32 %v2662_v10, %v2371_v2  ;;  %1365 = vmatpush.bf16.msrb.mxu1 %v2360_v62  ;;  %v2344_v24 = vor.u32 %v2652_v12, %v2341_v19  ;;  %v2348_v25 = vor.u32 %v2655_v21, %v2347_v20  ;;  %v2307_v10 = vld [vmem:[#allocation4 + $0x40] sm:$0xf]  ;;  %v2642_v62 = vld [vmem:[#allocation4 + $0x2c] sm:$0xf0]  ;;  %v2641_v12 = vld [vmem:[#allocation4 + $0x2c] sm:$0xf] }
 0x117   : > { %v2308_v31 = vor.u32 %v2646_v8, %v2307_v10  ;;  %v2638_v19 = vld [vmem:[#allocation4 + $0xc] sm:$0xf0]  ;;  %v2636_v20 = vld [vmem:[#allocation4 + $0x4] sm:$0xf]  ;;  %v2277_v21 = vld [vmem:[#allocation4 + $0x10] sm:$0xf0] }
 0x118   : > { %v3173_v28 = vadd.f32 %v833_v27, %v832_v26  ;;  %1351 = vmatpush.bf16.msrb.mxu0 %v2372_v48  ;;  %v2653_v26 = vld [vmem:[#allocation4 + $0x8c] sm:$0xf]  ;;  %v2349_v27 = vld [vmem:[#allocation4 + $0x98] sm:$0xf0]  ;;  %1379 = vmatpush.bf16.msrb.mxu2 %v2348_v25  ;;  %v2644_v48 = vld [vmem:[#allocation4 + $0x44] sm:$0xf] }
 0x119   : > { %v2352_v29 = vor.u32 %v2653_v26, %v2349_v27  ;;  %v2312_v57 = vor.u32 %v2644_v48, %v2309_v52  ;;  %v2280_v26 = vor.u32 %v2636_v20, %v2277_v21  ;;  %v2283_v27 = vld [vmem:[#allocation4 + $0x8] sm:$0xf] }
 0x11a   : > { %1366 = vmatpush.bf16.msrb.mxu1 %v2344_v24 }
 0x11b   : > { %1392 = vmatpush.bf16.msrb.mxu3 %v2352_v29  ;;  %v2639_v29 = vld [vmem:[#allocation4 + $0x14] sm:$0xf0] }
 0x11c   : > { %1352 = vmatpush.bf16.msrb.mxu0 %v2356_v32  ;;  %v2645_v32 = vld [vmem:[#allocation4 + $0x4c] sm:$0xf]  ;;  %v2284_v36 = vor.u32 %v2639_v29, %v2283_v27  ;;  %v2519_v27 = vld [vmem:[#allocation4 + $0xe0] sm:$0xf]  ;;  %v2698_v29 = vld [vmem:[#allocation4 + $0xec] sm:$0xf0] }
 0x11d   : > { %v2320_v61 = vor.u32 %v2645_v32, %v2317_v59 }
 0x11e   : > { %1367 = vmatpush.bf16.msrb.mxu1 %v2328_v41 }
 0x11f   : > { %1393 = vmatpush.bf16.msrb.mxu3 %v2336_v45 }
 0x120   : > { %1353 = vmatpush.bf16.msrb.mxu0 %v2340_v18 }
 0x122   : > { %1368 = vmatpush.bf16.msrb.mxu1 %v2312_v57 }
 0x123   : > { %1394 = vmatpush.bf16.msrb.mxu3 %v2320_v61 }
 0x124   : > { %1354 = vmatpush.bf16.msrb.mxu0 %v2324_v37  ;;  %v2285_v37 = vld [vmem:[#allocation4 + $0x18] sm:$0xf0] }
 0x128   : > { %1355 = vmatpush.bf16.msrb.mxu0 %v2308_v31 }
 0x182   : > { %v1041_v13 = vpop.f32.mrf.mxu0  ;;  %v1054_v17 = vpop.f32.mrf.mxu1 }
 0x183   : > { %v1084_v22 = vadd.f32 %v1041_v13, %v3148_v4  ;;  %v3177_v23 = vadd.f32 %v1054_v17, %v3165_v39  ;;  %v2651_v4 = vld [vmem:[#allocation4 + $0x74] sm:$0xf0]  ;;  %v2301_v13 = vld [vmem:[#allocation4 + $0x38] sm:$0xf0]  ;;  %v2275_v17 = vld [vmem:[#allocation4] sm:$0xf] }
 0x184   : > { %v2332_v39 = vor.u32 %v2651_v4, %v2331_v40  ;;  %v2304_v18 = vor.u32 %v2641_v12, %v2301_v13  ;;  %v2276_v25 = vor.u32 %v2638_v19, %v2275_v17  ;;  %v2288_v40 = vor.u32 %v2637_v34, %v2285_v37  ;;  %v2696_v34 = vld [vmem:[#allocation4 + $0xe4] sm:$0xf]  ;;  %v2699_v37 = vld [vmem:[#allocation4 + $0xf4] sm:$0xf0] }
 0x185   : > { %2746 = vtanh.f32 %v1084_v22 }
 0x186   : > { %1380 = vmatpush.bf16.msrb.mxu2 %v2332_v39  ;;  %1395 = vmatpush.bf16.msrb.mxu3 %v2304_v18 }
 0x189   : > { %v1067_v47 = vpop.f32.mrf.mxu2  ;;  %v1080_v2 = vpop.f32.mrf.mxu3 }
 0x18a   : > { %v1086_v49 = vadd.f32 %v1067_v47, %v3150_v7  ;;  %v1043_v6 = vpop.f32.mrf.mxu0  ;;  %v1056_v50 = vpop.f32.mrf.mxu1  ;;  %v1087_v56 = vadd.f32 %v1080_v2, %v3135_v16  ;;  %1381 = vmatpush.bf16.msrb.mxu2 %v2316_v58  ;;  %v2291_v7 = vld [vmem:[#allocation4 + $0x20] sm:$0xf]  ;;  %v2296_v16 = vor.u32 %v2640_v63, %v2293_v1  ;;  %1396 = vmatpush.bf16.msrb.mxu3 %v2288_v40  ;;  %v2691_v58 = vld [vmem:[#allocation4 + $0xb4] sm:$0xf0] }
 0x18b   : > { %v2747_v55 = vpop.eup %2746  ;;  %v2292_v0 = vor.u32 %v2642_v62, %v2291_v7 }
 0x18c   : > { %v2269_v60 = vmul.f32 -1.442695, %v2747_v55  ;;  %2748 = vtanh.f32 %v1086_v49  ;;  %1369 = vmatpush.bf16.msrb.mxu1 %v2296_v16 }
 0x18d   : > { %1356 = vmatpush.bf16.msrb.mxu0 %v2292_v0 }
 0x18e   : > { %2750 = vpow2.f32 %v2269_v60  ;;  %1382 = vmatpush.bf16.msrb.mxu2 %v2300_v11 }
 0x18f   : > { %2752 = vtanh.f32 %v1087_v56 }
 0x190   : > { %1370 = vmatpush.bf16.msrb.mxu1 %v2280_v26 }
 0x191   : > { %v1069_v22 = vpop.f32.mrf.mxu2  ;;  %v1082_v24 = vpop.f32.mrf.mxu3  ;;  %1357 = vmatpush.bf16.msrb.mxu0 %v2276_v25 }
 0x192   : > { %v2749_v35 = vpop.eup %2748  ;;  %1383 = vmatpush.bf16.msrb.mxu2 %v2284_v36  ;;  %v2527_v36 = vld [vmem:[#allocation4 + $0xe8] sm:$0xf] }
 0x193   : > { %v2270_v38 = vmul.f32 -1.442695, %v2749_v35  ;;  %v2521_v35 = vld [vmem:[#allocation4 + $0xf0] sm:$0xf0]  ;;  %v2528_v40 = vor.u32 %v2699_v37, %v2527_v36  ;;  %v2465_v36 = vld [vmem:[#allocation4 + $0x78] sm:$0xf0] }
 0x194   : > { %v2751_v4 = vpop.eup %2750 }
 0x195   : > { %v2753_v41 = vpop.eup %2752  ;;  %v1095_v39 = vadd.f32 1.0, %v2751_v4  ;;  %2754 = vpow2.f32 %v2270_v38  ;;  %v2524_v38 = vor.u32 %v2696_v34, %v2521_v35  ;;  %v2697_v4 = vld [vmem:[#allocation4 + $0xec] sm:$0xf]  ;;  %v2463_v34 = vld [vmem:[#allocation4 + $0x68] sm:$0xf] }
 0x196   : > { %v2271_v42 = vmul.f32 -1.442695, %v2753_v41  ;;  %v2529_v41 = vld [vmem:[#allocation4 + $0xf8] sm:$0xf0]  ;;  %1694 = vmatpush.bf16.msra.mxu2 %v2528_v40  ;;  %v2681_v35 = vld [vmem:[#allocation4 + $0x6c] sm:$0xf] }
 0x197   : > { %2756 = vrcp.f32 %v1095_v39  ;;  %v1105_v53 = vand.u32 2147483647, %v1095_v39  ;;  %v1107_v54 = vand.u32 2147483648, %v1095_v39  ;;  %vm1101_vm13 = vweird.f32 %v1095_v39  ;;  %1681 = vmatpush.bf16.msra.mxu1 %v2524_v38 }
 0x198   : > { %2758 = vpow2.f32 %v2271_v42  ;;  %v2503_v42 = vld [vmem:[#allocation4 + $0xc0] sm:$0xf]  ;;  %v2468_v37 = vor.u32 %v2681_v35, %v2465_v36 }
 0x199   : > { %vm1106_vm0 = vcmp.eq.f32.partialorder %v1105_v53, 8.507059e+37  ;;  %v1108_v61 = vor.u32 1.1754944e-38, %v1107_v54  ;;  %v2690_v53 = vld [vmem:[#allocation4 + $0xac] sm:$0xf0]  ;;  %v2688_v54 = vld [vmem:[#allocation4 + $0xa4] sm:$0xf] }
 0x19b   : > { %v2755_v43 = vpop.eup %2754 }
 0x19c   : > { %v1115_v45 = vadd.f32 1.0, %v2755_v43  ;;  %v2694_v43 = vld [vmem:[#allocation4 + $0xcc] sm:$0xf0] }
 0x19d   : > { %v2757_v47 = vpop.eup %2756 }
 0x19e   : > { %v2759_v2 = vpop.eup %2758  ;;  %v1097_v10 = vmul.f32 %v2757_v47, %v1095_v39  ;;  %2760 = vrcp.f32 %v1115_v45  ;;  %vm1102_vm12 = vweird.f32 %v2757_v47  ;;  %v1127_v57 = vand.u32 2147483648, %v1115_v45 }
 0x19f   : > { %2762 = vtanh.f32 %v3177_v23  ;;  %v1134_v8 = vadd.f32 1.0, %v2759_v2  ;;  %vm3182_vm14 = vmor %vm1101_vm13, %vm1102_vm12  ;;  %v1125_v60 = vand.u32 2147483647, %v1115_v45  ;;  %vm1121_vm1 = vweird.f32 %v1115_v45  ;;  %v2505_v2 = vld [vmem:[#allocation4 + $0xd0] sm:$0xf0] }
 0x1a0   : > { %v1098_v48 = vsub.f32 1.0, %v1097_v10  ;;  %v1128_v63 = vor.u32 1.1754944e-38, %v1127_v57  ;;  %v2532_v39 = vor.u32 %v2697_v4, %v2529_v41  ;;  %v2511_v10 = vld [vmem:[#allocation4 + $0xc8] sm:$0xf]  ;;  %v2439_v4 = vld [vmem:[#allocation4 + $0x40] sm:$0xf] }
 0x1a1   : > { %2764 = vrcp.f32 %v1134_v8  ;;  %v1146_v0 = vand.u32 2147483648, %v1134_v8  ;;  %v1144_v9 = vand.u32 2147483647, %v1134_v8  ;;  %vm1126_vm4 = vcmp.eq.f32.partialorder %v1125_v60, 8.507059e+37  ;;  %v2495_v57 = vld [vmem:[#allocation4 + $0xa8] sm:$0xf] }
 0x1a2   : > { %v1099_v49 = vmul.f32 %v2757_v47, %v1098_v48  ;;  %vm1140_vm5 = vweird.f32 %v1134_v8  ;;  %1707 = vmatpush.bf16.msra.mxu3 %v2532_v39  ;;  %v2497_v60 = vld [vmem:[#allocation4 + $0xb8] sm:$0xf0]  ;;  %v2678_v41 = vld [vmem:[#allocation4 + $0x4c] sm:$0xf0]  ;;  %v2676_v39 = vld [vmem:[#allocation4 + $0x44] sm:$0xf] }
 0x1a3   : > { %v1147_v19 = vor.u32 1.1754944e-38, %v1146_v0  ;;  %vm1145_vm7 = vcmp.eq.f32.partialorder %v1144_v9, 8.507059e+37  ;;  %v2473_v9 = vld [vmem:[#allocation4 + $0x90] sm:$0xf0] }
 0x1a4   : > { %v2761_v6 = vpop.eup %2760  ;;  %v1100_v31 = vadd.f32 %v2757_v47, %v1099_v49 }
 0x1a5   : > { %v2763_v50 = vpop.eup %2762  ;;  %v1117_v52 = vmul.f32 %v2761_v6, %v1115_v45  ;;  %vm1122_vm15 = vweird.f32 %v2761_v6  ;;  %v2692_v45 = vld [vmem:[#allocation4 + $0xc4] sm:$0xf] }
 0x1a6   : > { %2766 = vtanh.f32 %v2763_v50  ;;  %v1104_v32 = vsel %vm3182_vm14, %v2757_v47, %v1100_v31  ;;  %vm1123_vm2 = vmor %vm1121_vm1, %vm1122_vm15  ;;  %v2504_v47 = vor.u32 %v2694_v43, %v2503_v42  ;;  %v2508_v48 = vor.u32 %v2692_v45, %v2505_v2  ;;  %v2513_v50 = vld [vmem:[#allocation4 + $0xd8] sm:$0xf0]  ;;  %v2441_v2 = vld [vmem:[#allocation4 + $0x50] sm:$0xf0] }
 0x1a7   : > { %v2765_v55 = vpop.eup %2764  ;;  %v1118_v56 = vsub.f32 1.0, %v1117_v52  ;;  %2768 = vtanh.f32 %v3173_v28  ;;  %v1109_v1 = vsel %vm1106_vm0, %v1108_v61, %v1104_v32  ;;  %v2487_v52 = vld [vmem:[#allocation4 + $0xa0] sm:$0xf]  ;;  %v2496_v32 = vor.u32 %v2691_v58, %v2495_v57  ;;  %v2425_v58 = vld [vmem:[#allocation4 + $0x30] sm:$0xf0] }
 0x1a8   : > { %v1136_v23 = vmul.f32 %v2765_v55, %v1134_v8  ;;  %vm1141_vm3 = vweird.f32 %v2765_v55  ;;  %v1150_v17 = vmul.f32 %v1109_v1, %v3173_v28  ;;  %v2520_v28 = vor.u32 %v2698_v29, %v2519_v27  ;;  %v2695_v8 = vld [vmem:[#allocation4 + $0xd4] sm:$0xf0]  ;;  %1682 = vmatpush.bf16.msra.mxu1 %v2508_v48  ;;  %v2457_v29 = vld [vmem:[#allocation4 + $0x70] sm:$0xf0] }
 0x1a9   : > { %v1119_v59 = vmul.f32 %v2761_v6, %v1118_v56  ;;  %vm1142_vm6 = vmor %vm1140_vm5, %vm1141_vm3  ;;  %v2512_v49 = vor.u32 %v2695_v8, %v2511_v10  ;;  %v2489_v56 = vld [vmem:[#allocation4 + $0xb0] sm:$0xf0]  ;;  %v2447_v10 = vld [vmem:[#allocation4 + $0x48] sm:$0xf] }
 0x1aa   : > { %v1137_v7 = vsub.f32 1.0, %v1136_v23  ;;  %1668 = vmatpush.bf16.msra.mxu0 %v2520_v28  ;;  %v2492_v23 = vor.u32 %v2688_v54, %v2489_v56  ;;  %v2679_v8 = vld [vmem:[#allocation4 + $0x54] sm:$0xf0]  ;;  %v2672_v56 = vld [vmem:[#allocation4 + $0x24] sm:$0xf] }
 0x1ab   : > { %v1120_v62 = vadd.f32 %v2761_v6, %v1119_v59  ;;  %1695 = vmatpush.bf16.msra.mxu2 %v2512_v49  ;;  %v2689_v59 = vld [vmem:[#allocation4 + $0xac] sm:$0xf] }
 0x1ac   : > { %v1138_v3 = vmul.f32 %v2765_v55, %v1137_v7  ;;  %v2767_v11 = vpop.eup %2766  ;;  %v2500_v61 = vor.u32 %v2689_v59, %v2497_v60  ;;  %1683 = vmatpush.bf16.msra.mxu1 %v2492_v23  ;;  %v2471_v7 = vld [vmem:[#allocation4 + $0x80] sm:$0xf]  ;;  %v2431_v23 = vld [vmem:[#allocation4 + $0x28] sm:$0xf]  ;;  %v2673_v60 = vld [vmem:[#allocation4 + $0x2c] sm:$0xf] }
 0x1ad   : > { %v1124_v16 = vsel %vm1123_vm2, %v2761_v6, %v1120_v62  ;;  %v2769_v20 = vpop.eup %2768  ;;  %v2693_v6 = vld [vmem:[#allocation4 + $0xcc] sm:$0xf]  ;;  %v2686_v62 = vld [vmem:[#allocation4 + $0x8c] sm:$0xf0] }
 0x1ae   : > { %v1129_v12 = vsel %vm1126_vm4, %v1128_v63, %v1124_v16  ;;  %v1139_v13 = vadd.f32 %v2765_v55, %v1138_v3  ;;  %1669 = vmatpush.bf16.msra.mxu0 %v2504_v47  ;;  %v2516_v31 = vor.u32 %v2693_v6, %v2513_v50  ;;  %v2684_v63 = vld [vmem:[#allocation4 + $0x84] sm:$0xf]  ;;  %v2472_v3 = vor.u32 %v2686_v62, %v2471_v7  ;;  %v2479_v16 = vld [vmem:[#allocation4 + $0x88] sm:$0xf]  ;;  %v2407_v7 = vld [vmem:[#allocation4] sm:$0xf] }
 0x1af   : > { %v1151_v18 = vmul.f32 %v2767_v11, %v1129_v12  ;;  %1696 = vmatpush.bf16.msra.mxu2 %v2496_v32  ;;  %v2687_v11 = vld [vmem:[#allocation4 + $0x94] sm:$0xf0]  ;;  %v2440_v47 = vor.u32 %v2678_v41, %v2439_v4  ;;  %v2444_v6 = vor.u32 %v2676_v39, %v2441_v2  ;;  %v2448_v50 = vor.u32 %v2679_v8, %v2447_v10 }
 0x1b0   : > { %v1143_v21 = vsel %vm1142_vm6, %v2765_v55, %v1139_v13  ;;  %1708 = vmatpush.bf16.msra.mxu3 %v2516_v31  ;;  %v2488_v55 = vor.u32 %v2690_v53, %v2487_v52  ;;  %v2677_v31 = vld [vmem:[#allocation4 + $0x4c] sm:$0xf]  ;;  %v2449_v52 = vld [vmem:[#allocation4 + $0x58] sm:$0xf0]  ;;  %v2675_v32 = vld [vmem:[#allocation4 + $0x34] sm:$0xf0] }
 0x1b1   : > { %v1148_v22 = vsel %vm1145_vm7, %v1147_v19, %v1143_v21  ;;  %v3190_v24 = vadd.f32 %v1151_v18, %v1150_v17  ;;  %v2476_v17 = vor.u32 %v2684_v63, %v2473_v9  ;;  %v2480_v18 = vor.u32 %v2687_v11, %v2479_v16  ;;  %v2685_v19 = vld [vmem:[#allocation4 + $0x8c] sm:$0xf]  ;;  %v2670_v63 = vld [vmem:[#allocation4 + $0xc] sm:$0xf0] }
 0x1b2   : > { %v1154_v25 = vmul.f32 %v2769_v20, %v1148_v22  ;;  %1670 = vmatpush.bf16.msra.mxu0 %v2488_v55  ;;  %v2481_v20 = vld [vmem:[#allocation4 + $0x98] sm:$0xf0]  ;;  %v2455_v22 = vld [vmem:[#allocation4 + $0x60] sm:$0xf]  ;;  %v2452_v54 = vor.u32 %v2677_v31, %v2449_v52  ;;  %v2674_v55 = vld [vmem:[#allocation4 + $0x2c] sm:$0xf0]  ;;  %v2432_v59 = vor.u32 %v2675_v32, %v2431_v23  ;;  %v2408_v16 = vor.u32 %v2670_v63, %v2407_v7 }
 0x1b3   : > { %v2484_v21 = vor.u32 %v2685_v19, %v2481_v20  ;;  %1684 = vmatpush.bf16.msra.mxu1 %v2476_v17  ;;  %1697 = vmatpush.bf16.msra.mxu2 %v2480_v18  ;;  %v2671_v17 = vld [vmem:[#allocation4 + $0x14] sm:$0xf0]  ;;  %v2669_v18 = vld [vmem:[#allocation4 + $0xc] sm:$0xf] }
 0x1b4   : > { %v1155_v26 = vpack.c.bf16 %v1154_v25, %v1154_v25  ;;  %1709 = vmatpush.bf16.msra.mxu3 %v2500_v61  ;;  %v2682_v25 = vld [vmem:[#allocation4 + $0x6c] sm:$0xf0]  ;;  %v2433_v61 = vld [vmem:[#allocation4 + $0x38] sm:$0xf0] }
 0x1b5   : > { %v2456_v27 = vor.u32 %v2682_v25, %v2455_v22  ;;  %v2436_v62 = vor.u32 %v2673_v60, %v2433_v61 }
 0x1b6   : > { %2272 = vst [vmem:[%s2908_s5 + $0x8] sm:$0xf] %v1155_v26  ;;  %1358 = vmatmul.bf16.vlgmr.msrb.gmra.mxu0 %v1155_v26  ;;  %1371 = vmatmul.bf16.vlgmr.msrb.gmra.mxu1 %v1155_v26 }
 0x1b7   : > { %1384 = vmatmul.bf16.vlgmr.msrb.gmra.mxu2 %v1155_v26  ;;  %1397 = vmatmul.bf16.vlgmr.msrb.gmra.mxu3 %v1155_v26  ;;  %v2680_v26 = vld [vmem:[#allocation4 + $0x64] sm:$0xf] }
 0x1b8   : > { %1671 = vmatpush.bf16.msra.mxu0 %v2472_v3  ;;  %1710 = vmatpush.bf16.msra.mxu3 %v2484_v21  ;;  %v2460_v28 = vor.u32 %v2680_v26, %v2457_v29  ;;  %v2417_v21 = vld [vmem:[#allocation4 + $0x18] sm:$0xf0] }
 0x1b9   : > { %v2420_v25 = vor.u32 %v2669_v18, %v2417_v21 }
 0x1ba   : > { %1685 = vmatpush.bf16.msra.mxu1 %v2460_v28 }
 0x1bc   : > { %1672 = vmatpush.bf16.msra.mxu0 %v2456_v27  ;;  %1711 = vmatpush.bf16.msra.mxu3 %v2468_v37 }
 0x1be   : > { %1686 = vmatpush.bf16.msra.mxu1 %v2444_v6 }
 0x1c0   : > { %1673 = vmatpush.bf16.msra.mxu0 %v2440_v47  ;;  %1712 = vmatpush.bf16.msra.mxu3 %v2452_v54 }
 0x1c4   : > { %1713 = vmatpush.bf16.msra.mxu3 %v2436_v62 }
 0x1c8   : > { %1714 = vmatpush.bf16.msra.mxu3 %v2420_v25 }
 0x233   : > { %v1359_v0 = vpop.f32.mrf.mxu0  ;;  %v1372_v1 = vpop.f32.mrf.mxu1 }
 0x234   : > { %v1402_v12 = vadd.f32 %v1359_v0, %v3154_v14  ;;  %v3195_v13 = vadd.f32 %v1372_v1, %v3167_v46  ;;  %v2683_v14 = vld [vmem:[#allocation4 + $0x74] sm:$0xf0]  ;;  %v2668_v0 = vld [vmem:[#allocation4 + $0x4] sm:$0xf]  ;;  %v2409_v1 = vld [vmem:[#allocation4 + $0x10] sm:$0xf0] }
 0x235   : > { %v2464_v46 = vor.u32 %v2683_v14, %v2463_v34  ;;  %v2412_v11 = vor.u32 %v2668_v0, %v2409_v1 }
 0x236   : > { %2770 = vtanh.f32 %v1402_v12  ;;  %v2415_v12 = vld [vmem:[#allocation4 + $0x8] sm:$0xf] }
 0x237   : > { %1698 = vmatpush.bf16.msra.mxu2 %v2464_v46  ;;  %v2416_v20 = vor.u32 %v2671_v17, %v2415_v12 }
 0x23a   : > { %v1385_v38 = vpop.f32.mrf.mxu2  ;;  %v1398_v40 = vpop.f32.mrf.mxu3 }
 0x23b   : > { %v1404_v42 = vadd.f32 %v1385_v38, %v3156_v15  ;;  %v1361_v43 = vpop.f32.mrf.mxu0  ;;  %v1374_v45 = vpop.f32.mrf.mxu1  ;;  %v1405_v49 = vadd.f32 %v1398_v40, %v3139_v44  ;;  %1699 = vmatpush.bf16.msra.mxu2 %v2448_v50  ;;  %v2423_v15 = vld [vmem:[#allocation4 + $0x20] sm:$0xf]  ;;  %v2428_v44 = vor.u32 %v2672_v56, %v2425_v58 }
 0x23c   : > { %v2771_v48 = vpop.eup %2770  ;;  %v2424_v57 = vor.u32 %v2674_v55, %v2423_v15 }
 0x23d   : > { %v2401_v53 = vmul.f32 -1.442695, %v2771_v48  ;;  %2772 = vtanh.f32 %v1404_v42  ;;  %1687 = vmatpush.bf16.msra.mxu1 %v2428_v44 }
 0x23e   : > { %1674 = vmatpush.bf16.msra.mxu0 %v2424_v57 }
 0x23f   : > { %2774 = vpow2.f32 %v2401_v53  ;;  %1700 = vmatpush.bf16.msra.mxu2 %v2432_v59 }
 0x240   : > { %2776 = vtanh.f32 %v1405_v49 }
 0x241   : > { %1688 = vmatpush.bf16.msra.mxu1 %v2412_v11 }
 0x242   : > { %v1387_v3 = vpop.f32.mrf.mxu2  ;;  %v1400_v9 = vpop.f32.mrf.mxu3  ;;  %1675 = vmatpush.bf16.msra.mxu0 %v2408_v16 }
 0x243   : > { %v2773_v19 = vpop.eup %2772  ;;  %1701 = vmatpush.bf16.msra.mxu2 %v2416_v20 }
 0x244   : > { %v2402_v22 = vmul.f32 -1.442695, %v2773_v19 }
 0x245   : > { %v2775_v26 = vpop.eup %2774 }
 0x246   : > { %v2777_v27 = vpop.eup %2776  ;;  %v1413_v29 = vadd.f32 1.0, %v2775_v26  ;;  %2778 = vpow2.f32 %v2402_v22 }
 0x247   : > { %v2403_v34 = vmul.f32 -1.442695, %v2777_v27 }
 0x248   : > { %2780 = vrcp.f32 %v1413_v29  ;;  %v1423_v43 = vand.u32 2147483647, %v1413_v29  ;;  %v1425_v45 = vand.u32 2147483648, %v1413_v29  ;;  %vm1419_vm9 = vweird.f32 %v1413_v29 }
 0x249   : > { %2782 = vpow2.f32 %v2403_v34 }
 0x24a   : > { %vm1424_vm12 = vcmp.eq.f32.partialorder %v1423_v43, 8.507059e+37  ;;  %v1426_v50 = vor.u32 1.1754944e-38, %v1425_v45 }
 0x24c   : > { %v2779_v14 = vpop.eup %2778 }
 0x24d   : > { %v1433_v28 = vadd.f32 1.0, %v2779_v14 }
 0x24e   : > { %v2781_v46 = vpop.eup %2780 }
 0x24f   : > { %v2783_v35 = vpop.eup %2782  ;;  %v1415_v36 = vmul.f32 %v2781_v46, %v1413_v29  ;;  %2784 = vrcp.f32 %v1433_v28  ;;  %vm1420_vm8 = vweird.f32 %v2781_v46  ;;  %v1445_v10 = vand.u32 2147483648, %v1433_v28 }
 0x250   : > { %2786 = vtanh.f32 %v3195_v13  ;;  %v1452_v37 = vadd.f32 1.0, %v2783_v35  ;;  %vm3200_vm10 = vmor %vm1419_vm9, %vm1420_vm8  ;;  %v1443_v6 = vand.u32 2147483647, %v1433_v28  ;;  %vm1439_vm13 = vweird.f32 %v1433_v28 }
 0x251   : > { %v1416_v38 = vsub.f32 1.0, %v1415_v36  ;;  %v1446_v53 = vor.u32 1.1754944e-38, %v1445_v10 }
 0x252   : > { %2788 = vrcp.f32 %v1452_v37  ;;  %v1464_v54 = vand.u32 2147483648, %v1452_v37  ;;  %v1462_v56 = vand.u32 2147483647, %v1452_v37  ;;  %vm1444_vm0 = vcmp.eq.f32.partialorder %v1443_v6, 8.507059e+37 }
 0x253   : > { %v1417_v40 = vmul.f32 %v2781_v46, %v1416_v38  ;;  %vm1458_vm1 = vweird.f32 %v1452_v37 }
 0x254   : > { %v1465_v60 = vor.u32 1.1754944e-38, %v1464_v54  ;;  %vm1463_vm3 = vcmp.eq.f32.partialorder %v1462_v56, 8.507059e+37 }
 0x255   : > { %v2785_v4 = vpop.eup %2784  ;;  %v1418_v39 = vadd.f32 %v2781_v46, %v1417_v40 }
 0x256   : > { %v2787_v41 = vpop.eup %2786  ;;  %v1435_v42 = vmul.f32 %v2785_v4, %v1433_v28  ;;  %vm1440_vm11 = vweird.f32 %v2785_v4 }
 0x257   : > { %2790 = vtanh.f32 %v2787_v41  ;;  %v1422_v48 = vsel %vm3200_vm10, %v2781_v46, %v1418_v39  ;;  %vm1441_vm14 = vmor %vm1439_vm13, %vm1440_vm11 }
 0x258   : > { %v2789_v47 = vpop.eup %2788  ;;  %v1436_v2 = vsub.f32 1.0, %v1435_v42  ;;  %2792 = vtanh.f32 %v3190_v24  ;;  %v1427_v15 = vsel %vm1424_vm12, %v1426_v50, %v1422_v48 }
 0x259   : > { %v1454_v13 = vmul.f32 %v2789_v47, %v1452_v37  ;;  %vm1459_vm15 = vweird.f32 %v2789_v47  ;;  %v1468_v44 = vmul.f32 %v1427_v15, %v3190_v24 }
 0x25a   : > { %v1437_v49 = vmul.f32 %v2785_v4, %v1436_v2  ;;  %vm1460_vm2 = vmor %vm1458_vm1, %vm1459_vm15 }
 0x25b   : > { %v1455_v31 = vsub.f32 1.0, %v1454_v13 }
 0x25c   : > { %v1438_v52 = vadd.f32 %v2785_v4, %v1437_v49 }
 0x25d   : > { %v1456_v55 = vmul.f32 %v2789_v47, %v1455_v31  ;;  %v2791_v58 = vpop.eup %2790 }
 0x25e   : > { %v1442_v57 = vsel %vm1441_vm14, %v2785_v4, %v1438_v52  ;;  %v2793_v61 = vpop.eup %2792 }
 0x25f   : > { %v1447_v23 = vsel %vm1444_vm0, %v1446_v53, %v1442_v57  ;;  %v1457_v32 = vadd.f32 %v2789_v47, %v1456_v55 }
 0x260   : > { %v1469_v59 = vmul.f32 %v2791_v58, %v1447_v23 }
 0x261   : > { %v1461_v7 = vsel %vm1460_vm2, %v2789_v47, %v1457_v32 }
 0x262   : > { %v1466_v62 = vsel %vm1463_vm3, %v1465_v60, %v1461_v7  ;;  %v3208_v63 = vadd.f32 %v1469_v59, %v1468_v44 }
 0x263   : > { %v1472_v0 = vmul.f32 %v2793_v61, %v1466_v62 }
 0x265   : > { %v1473_v1 = vpack.c.bf16 %v1472_v0, %v1472_v0 }
 0x267   : > { %2404 = vst [vmem:[%s2908_s5 + $0xc] sm:$0xf] %v1473_v1  ;;  %1676 = vmatmul.bf16.vlgmr.msra.gmra.mxu0 %v1473_v1  ;;  %1689 = vmatmul.bf16.vlgmr.msra.gmra.mxu1 %v1473_v1 }
 0x268   : > { %1702 = vmatmul.bf16.vlgmr.msra.gmra.mxu2 %v1473_v1  ;;  %1715 = vmatmul.bf16.vlgmr.msra.gmra.mxu3 %v1473_v1 }
 0x2e4   : > { %v1677_v3 = vpop.f32.mrf.mxu0  ;;  %v1690_v9 = vpop.f32.mrf.mxu1 }
 0x2e5   : > { %v1720_v24 = vadd.f32 %v1677_v3, %v3160_v30  ;;  %v1721_v28 = vadd.f32 %v1690_v9, %v3169_v51 }
 0x2e7   : > { %2794 = vtanh.f32 %v1720_v24 }
 0x2eb   : > { %v1703_v16 = vpop.f32.mrf.mxu2  ;;  %v1716_v11 = vpop.f32.mrf.mxu3 }
 0x2ec   : > { %v1722_v12 = vadd.f32 %v1703_v16, %v3162_v33  ;;  %v1679_v17 = vpop.f32.mrf.mxu0  ;;  %v1692_v18 = vpop.f32.mrf.mxu1  ;;  %v1723_v20 = vadd.f32 %v1716_v11, %v3142_v5 }
 0x2ed   : > { %v2795_v19 = vpop.eup %2794 }
 0x2ee   : > { %v2533_v21 = vmul.f32 -1.442695, %v2795_v19  ;;  %2796 = vtanh.f32 %v1722_v12 }
 0x2f0   : > { %2798 = vpow2.f32 %v2533_v21 }
 0x2f1   : > { %2800 = vtanh.f32 %v1723_v20 }
 0x2f3   : > { %v1705_v22 = vpop.f32.mrf.mxu2  ;;  %v1718_v25 = vpop.f32.mrf.mxu3 }
 0x2f4   : > { %v2797_v26 = vpop.eup %2796 }
 0x2f5   : > { %v2534_v27 = vmul.f32 -1.442695, %v2797_v26 }
 0x2f6   : > { %v2799_v29 = vpop.eup %2798 }
 0x2f7   : > { %v2801_v30 = vpop.eup %2800  ;;  %v1731_v34 = vadd.f32 1.0, %v2799_v29  ;;  %2802 = vpow2.f32 %v2534_v27 }
 0x2f8   : > { %v2535_v14 = vmul.f32 -1.442695, %v2801_v30 }
 0x2f9   : > { %2804 = vrcp.f32 %v1731_v34  ;;  %v1743_v40 = vand.u32 2147483648, %v1731_v34  ;;  %v1741_v41 = vand.u32 2147483647, %v1731_v34  ;;  %vm1737_vm5 = vweird.f32 %v1731_v34 }
 0x2fa   : > { %2806 = vpow2.f32 %v2535_v14 }
 0x2fb   : > { %v1744_v45 = vor.u32 1.1754944e-38, %v1743_v40  ;;  %vm1742_vm7 = vcmp.eq.f32.partialorder %v1741_v41, 8.507059e+37 }
 0x2fd   : > { %v2803_v33 = vpop.eup %2802 }
 0x2fe   : > { %v1751_v46 = vadd.f32 1.0, %v2803_v33 }
 0x2ff   : > { %v2805_v5 = vpop.eup %2804 }
 0x300   : > { %v2807_v35 = vpop.eup %2806  ;;  %v1733_v36 = vmul.f32 %v2805_v5, %v1731_v34  ;;  %2808 = vrcp.f32 %v1751_v46  ;;  %vm1738_vm4 = vweird.f32 %v2805_v5  ;;  %v1763_v48 = vand.u32 2147483648, %v1751_v46 }
 0x301   : > { %2810 = vtanh.f32 %v1721_v28  ;;  %v1770_v37 = vadd.f32 1.0, %v2807_v35  ;;  %vm1739_vm6 = vmor %vm1737_vm5, %vm1738_vm4  ;;  %v1761_v50 = vand.u32 2147483647, %v1751_v46  ;;  %vm1757_vm9 = vweird.f32 %v1751_v46 }
 0x302   : > { %v1734_v38 = vsub.f32 1.0, %v1733_v36  ;;  %v1764_v54 = vor.u32 1.1754944e-38, %v1763_v48 }
 0x303   : > { %2812 = vrcp.f32 %v1770_v37  ;;  %v1782_v53 = vand.u32 2147483648, %v1770_v37  ;;  %v1780_v55 = vand.u32 2147483647, %v1770_v37  ;;  %vm1762_vm12 = vcmp.eq.f32.partialorder %v1761_v50, 8.507059e+37 }
 0x304   : > { %v1735_v4 = vmul.f32 %v2805_v5, %v1734_v38  ;;  %vm1776_vm13 = vweird.f32 %v1770_v37 }
 0x305   : > { %v1783_v44 = vor.u32 1.1754944e-38, %v1782_v53  ;;  %vm1781_vm15 = vcmp.eq.f32.partialorder %v1780_v55, 8.507059e+37 }
 0x306   : > { %v2809_v39 = vpop.eup %2808  ;;  %v1736_v42 = vadd.f32 %v2805_v5, %v1735_v4 }
 0x307   : > { %v2811_v43 = vpop.eup %2810  ;;  %v1753_v51 = vmul.f32 %v2809_v39, %v1751_v46  ;;  %vm1758_vm8 = vweird.f32 %v2809_v39 }
 0x308   : > { %v1740_v47 = vsel %vm1739_vm6, %v2805_v5, %v1736_v42  ;;  %2814 = vtanh.f32 %v2811_v43  ;;  %vm1759_vm10 = vmor %vm1757_vm9, %vm1758_vm8 }
 0x309   : > { %v2813_v2 = vpop.eup %2812  ;;  %v1745_v10 = vsel %vm1742_vm7, %v1744_v45, %v1740_v47  ;;  %v1754_v8 = vsub.f32 1.0, %v1753_v51  ;;  %2816 = vtanh.f32 %v3208_v63 }
 0x30a   : > { %v1786_v13 = vmul.f32 %v1745_v10, %v3208_v63  ;;  %v1772_v49 = vmul.f32 %v2813_v2, %v1770_v37  ;;  %vm1777_vm11 = vweird.f32 %v2813_v2 }
 0x30b   : > { %v1755_v6 = vmul.f32 %v2809_v39, %v1754_v8  ;;  %vm1778_vm14 = vmor %vm1776_vm13, %vm1777_vm11 }
 0x30c   : > { %v1773_v31 = vsub.f32 1.0, %v1772_v49 }
 0x30d   : > { %v1756_v52 = vadd.f32 %v2809_v39, %v1755_v6 }
 0x30e   : > { %v1774_v15 = vmul.f32 %v2813_v2, %v1773_v31  ;;  %v2815_v57 = vpop.eup %2814 }
 0x30f   : > { %v1760_v56 = vsel %vm1759_vm10, %v2809_v39, %v1756_v52  ;;  %v2817_v60 = vpop.eup %2816 }
 0x310   : > { %v1765_v58 = vsel %vm1762_vm12, %v1764_v54, %v1760_v56  ;;  %v1775_v23 = vadd.f32 %v2813_v2, %v1774_v15 }
 0x311   : > { %v1787_v32 = vmul.f32 %v2815_v57, %v1765_v58 }
 0x312   : > { %v1779_v59 = vsel %vm1778_vm14, %v2813_v2, %v1775_v23 }
 0x313   : > { %v1788_v61 = vadd.f32 %v1787_v32, %v1786_v13  ;;  %v1784_v7 = vsel %vm1781_vm15, %v1783_v44, %v1779_v59 }
 0x314   : > { %v1790_v62 = vmul.f32 %v2817_v60, %v1784_v7 }
 0x315   : > { %1792 = vst [vmem:[#allocation3] sm:$0xff] %v1788_v61 }
 0x316   : > { %1791 = vst [vmem:[#allocation2] sm:$0xff] %v1790_v62 }
 0x317 PF: > { %s15_s15 = sadd.s32 1, %s2858_s15  }
 0x318   : > { %p12_p8 = scmp.ge.s32.totalorder %s15_s15, 4  }
 0x31a   :  { %14 = sbr.rel (!%p12_p8) target bundleno = 1 (0x1), region = 78 }
 0x31f   :  { %1815 = vsyncpa [#allocation5], 1 }
 0x320   :  { %1817 = vsyncpa [#allocation5 + $0x1], 1 }

</bundles_post_ra>
